<compile_context>
chip_gen: v7x
topology: tpu7x:2x2x1
jax: 0.10.0
libtpu: 0.0.40
codegen_flags: <defaults>
</compile_context>

<pallas_src>
import jax
import jax.numpy as jnp
from jax.experimental import pallas as pl
from jax.experimental.pallas import tpu as pltpu
import numpy as np


def cross_attention_kernel(x1_ref, x2_ref, x2t_ref,
                           wq_ref, bq_ref, wkt_ref, bkt_ref, wv_ref, bv_ref,
                           wo_ref, bo_ref,
                           out_ref, attn_ref,
                           q_scr, kt_scr, v_scr, ctx_scr):
    # Per grid step (one batch element, one query tile):
    #   x1_ref: (1, TQ, C)   x2_ref: (1, N, C)   x2t_ref: (1, C, N)
    #   wq/wv/wo_ref: (C, C) in `x @ W` layout, wkt_ref: (C, C) (= Wk^T)
    #   bq/bv/bo_ref: (1, C), bkt_ref: (C, 1)
    #   out_ref: (1, TQ, C)  attn_ref: (1, H, TQ, N)
    #   scratch (f32): q_scr (TQ, C), kt_scr (C, N), v_scr (N, C), ctx_scr (TQ, C)
    H = attn_ref.shape[1]
    C = x1_ref.shape[2]
    hd = C // H
    scale = float(hd) ** -0.5

    x1 = x1_ref[0]                                              # (TQ, C)
    x2 = x2_ref[0]                                              # (N, C)
    x2t = x2t_ref[0]                                            # (C, N)

    # ---- Full-width projections: one MXU-friendly matmul each. -------------
    # q pre-scaled so the score matmuls need no extra multiply.
    q_scr[...] = (jnp.dot(x1, wq_ref[...],
                          preferred_element_type=jnp.float32)
                  + bq_ref[...]) * scale                        # (TQ, C)
    # K^T computed directly from transposed activations: no in-kernel transpose.
    kt_scr[...] = (jnp.dot(wkt_ref[...], x2t,
                           preferred_element_type=jnp.float32)
                   + bkt_ref[...])                              # (C, N) == K^T
    v_scr[...] = (jnp.dot(x2, wv_ref[...],
                          preferred_element_type=jnp.float32)
                  + bv_ref[...])                                # (N, C)

    # ---- Per-head attention (head slicing confined to this stage). ---------
    # Static unroll; all per-head operands come from / go to VMEM scratch, so
    # no accumulator stays live in vregs across iterations.
    for h in range(H):
        lo = h * hd
        q_h = q_scr[:, lo:lo + hd]                              # (TQ, hd)
        kt_h = kt_scr[lo:lo + hd, :]                            # (hd, N)
        s = jnp.dot(q_h, kt_h, preferred_element_type=jnp.float32)  # (TQ, N)
        s = s - jnp.max(s, axis=-1, keepdims=True)
        e = jnp.exp(s)
        # Softmax divide on the EUP slot (approx reciprocal) instead of VPU.
        a = e * pl.reciprocal(jnp.sum(e, axis=-1, keepdims=True), approx=True)
        attn_ref[0, h] = a.astype(attn_ref.dtype)
        ctx_scr[:, lo:lo + hd] = jnp.dot(a, v_scr[:, lo:lo + hd],
                                         preferred_element_type=jnp.float32)

    # ---- Single full-width output projection. -------------------------------
    out = jnp.dot(ctx_scr[...], wo_ref[...],
                  preferred_element_type=jnp.float32) + bo_ref[...]
    out_ref[0] = out.astype(out_ref.dtype)


def cross_attention_matcher(x1, x2, wq, bq, wk, bk, wv, bv, wo, bo,
                            *, num_heads, q_tile=None):
    """x1, x2: (B, N, C). Weights in `x @ W + b` layout: W (C, C), b (C,)."""
    B, N, C = x1.shape
    H = num_heads
    assert C % H == 0
    TQ = N if q_tile is None else q_tile
    assert N % TQ == 0 and (TQ == N or TQ % 8 == 0)
    n_q = N // TQ

    # One-time wrapper-side re-layouts (cheap XLA ops).
    x2t = jnp.swapaxes(x2, 1, 2)            # (B, C, N)
    wkt = wk.T                               # (C, C) = Wk^T
    bkt = bk.reshape(C, 1)
    bq2 = bq.reshape(1, C)
    bv2 = bv.reshape(1, C)
    bo2 = bo.reshape(1, C)

    w_spec = pl.BlockSpec((C, C), lambda b, qi: (0, 0))          # resident
    brow_spec = pl.BlockSpec((1, C), lambda b, qi: (0, 0))

    # Explicit scoped-VMEM budget (v5e default is only 16 MiB).
    itemsize = jnp.dtype(x1.dtype).itemsize
    blocks = ((TQ * C + N * C + C * N) * itemsize            # activations in
              + (4 * C * C + 4 * C) * itemsize               # weights/biases
              + TQ * C * itemsize + H * TQ * N * 4)          # outputs
    scratch = (2 * TQ * C + 2 * N * C) * 4
    est = 2 * blocks + scratch                               # ~double-buffered
    vmem_limit = int(min(max(2 * est, 32 * 1024 * 1024), 56 * 1024 * 1024))

    return pl.pallas_call(
        cross_attention_kernel,
        out_shape=(jax.ShapeDtypeStruct((B, N, C), x1.dtype),
                   jax.ShapeDtypeStruct((B, H, N, N), jnp.float32)),
        grid_spec=pltpu.PrefetchScalarGridSpec(
            num_scalar_prefetch=0,
            grid=(B, n_q),
            in_specs=[
                pl.BlockSpec((1, TQ, C), lambda b, qi: (b, qi, 0)),   # x1
                pl.BlockSpec((1, N, C), lambda b, qi: (b, 0, 0)),     # x2
                pl.BlockSpec((1, C, N), lambda b, qi: (b, 0, 0)),     # x2^T
                w_spec, brow_spec,                                    # Wq, bq
                w_spec, pl.BlockSpec((C, 1), lambda b, qi: (0, 0)),   # Wk^T, bk^T
                w_spec, brow_spec,                                    # Wv, bv
                w_spec, brow_spec,                                    # Wo, bo
            ],
            out_specs=[
                pl.BlockSpec((1, TQ, C), lambda b, qi: (b, qi, 0)),       # out
                pl.BlockSpec((1, H, TQ, N), lambda b, qi: (b, 0, qi, 0)),  # attn
            ],
            scratch_shapes=[
                pltpu.VMEM((TQ, C), jnp.float32),   # q (scaled)
                pltpu.VMEM((C, N), jnp.float32),    # K^T
                pltpu.VMEM((N, C), jnp.float32),    # V
                pltpu.VMEM((TQ, C), jnp.float32),   # ctx (heads re-assembled)
            ],
        ),
        compiler_params=pltpu.CompilerParams(
            dimension_semantics=("parallel", "parallel"),
            vmem_limit_bytes=vmem_limit),
    )(x1, x2, x2t, wq, bq2, wkt, bkt, wv, bv2, wo, bo2)


def _reference(x1, x2, wq, bq, wk, bk, wv, bv, wo, bo, H):
    """Pure-JAX mirror of the PyTorch forward (dropout p=0)."""
    B, N, C = x1.shape
    hd = C // H
    scale = hd ** -0.5

    def split(t):  # (B, N, C) -> (B, H, N, hd)
        return t.reshape(B, N, H, hd).transpose(0, 2, 1, 3)

    q = split(x1 @ wq + bq)
    k = split(x2 @ wk + bk)
    v = split(x2 @ wv + bv)
    s = jnp.einsum('bhnd,bhmd->bhnm', q, k) * scale
    attn = jax.nn.softmax(s, axis=-1)
    ctx = jnp.einsum('bhnm,bhmd->bhnd', attn, v)
    ctx = ctx.transpose(0, 2, 1, 3).reshape(B, N, C)
    out = ctx @ wo + bo
    return out, attn


if __name__ == "__main__":
    # Small config consistent with the module: dim=32, num_heads=8 -> head_dim=4,
    # batch=2, seq=8.
    B, N, C, H = 2, 8, 32, 8

    key = jax.random.PRNGKey(0)
    ks = jax.random.split(key, 10)
    x1 = jax.random.normal(ks[0], (B, N, C), dtype=jnp.float32)
    x2 = jax.random.normal(ks[1], (B, N, C), dtype=jnp.float32)
    wq = jax.random.normal(ks[2], (C, C), dtype=jnp.float32) * 0.05
    bq = jax.random.normal(ks[3], (C,), dtype=jnp.float32) * 0.05
    wk = jax.random.normal(ks[4], (C, C), dtype=jnp.float32) * 0.05
    bk = jax.random.normal(ks[5], (C,), dtype=jnp.float32) * 0.05
    wv = jax.random.normal(ks[6], (C, C), dtype=jnp.float32) * 0.05
    bv = jax.random.normal(ks[7], (C,), dtype=jnp.float32) * 0.05
    wo = jax.random.normal(ks[8], (C, C), dtype=jnp.float32) * 0.05
    bo = jax.random.normal(ks[9], (C,), dtype=jnp.float32) * 0.05

    out, attn = cross_attention_matcher(x1, x2, wq, bq, wk, bk, wv, bv, wo, bo,
                                        num_heads=H)
    out = jax.block_until_ready(out)
    attn = jax.block_until_ready(attn)

    out_ref, attn_ref = _reference(x1, x2, wq, bq, wk, bk, wv, bv, wo, bo, H)

    # Tolerances account for the EUP approx reciprocal in the softmax denom.
    np.testing.assert_allclose(np.asarray(attn), np.asarray(attn_ref),
                               rtol=1e-2, atol=1e-2)
    np.testing.assert_allclose(np.asarray(out), np.asarray(out_ref),
                               rtol=1e-2, atol=1e-2)
    assert out.shape == (B, N, C)
    assert attn.shape == (B, H, N, N)
    print("KERNEL_OK")
</pallas_src>

<mosaic_0001>
module attributes {stable_mosaic.version = 11 : i64} {
  func.func @cross_attention_kernel(%arg0: i32, %arg1: i32, %arg2: memref<1x8x32xf32, #tpu.memory_space<vmem>>, %arg3: memref<1x8x32xf32, #tpu.memory_space<vmem>>, %arg4: memref<1x32x8xf32, #tpu.memory_space<vmem>>, %arg5: memref<32x32xf32, #tpu.memory_space<vmem>>, %arg6: memref<1x32xf32, #tpu.memory_space<vmem>>, %arg7: memref<32x32xf32, #tpu.memory_space<vmem>>, %arg8: memref<32x1xf32, #tpu.memory_space<vmem>>, %arg9: memref<32x32xf32, #tpu.memory_space<vmem>>, %arg10: memref<1x32xf32, #tpu.memory_space<vmem>>, %arg11: memref<32x32xf32, #tpu.memory_space<vmem>>, %arg12: memref<1x32xf32, #tpu.memory_space<vmem>>, %arg13: memref<1x8x32xf32, #tpu.memory_space<vmem>>, %arg14: memref<1x8x8x8xf32, #tpu.memory_space<vmem>>, %arg15: memref<8x32xf32, #tpu.memory_space<vmem>>, %arg16: memref<32x8xf32, #tpu.memory_space<vmem>>, %arg17: memref<8x32xf32, #tpu.memory_space<vmem>>, %arg18: memref<8x32xf32, #tpu.memory_space<vmem>>) attributes {dimension_semantics = [#tpu.dimension_semantics<parallel>, #tpu.dimension_semantics<parallel>], iteration_bounds = array<i64: 2, 1>, scalar_prefetch = 0 : i64, scratch_operands = 4 : i64, tpu.core_type = #tpu.core_type<tc>, window_params = [{transform_indices = @transform_0, window_bounds = array<i64: 1, 8, 32>}, {transform_indices = @transform_1, window_bounds = array<i64: 1, 8, 32>}, {transform_indices = @transform_2, window_bounds = array<i64: 1, 32, 8>}, {pipeline_mode = #tpu.pipeline_mode<synchronous>, transform_indices = @transform_3, window_bounds = array<i64: 32, 32>}, {pipeline_mode = #tpu.pipeline_mode<synchronous>, transform_indices = @transform_4, window_bounds = array<i64: 1, 32>}, {pipeline_mode = #tpu.pipeline_mode<synchronous>, transform_indices = @transform_5, window_bounds = array<i64: 32, 32>}, {pipeline_mode = #tpu.pipeline_mode<synchronous>, transform_indices = @transform_6, window_bounds = array<i64: 32, 1>}, {pipeline_mode = #tpu.pipeline_mode<synchronous>, transform_indices = @transform_7, window_bounds = array<i64: 32, 32>}, {pipeline_mode = #tpu.pipeline_mode<synchronous>, transform_indices = @transform_8, window_bounds = array<i64: 1, 32>}, {pipeline_mode = #tpu.pipeline_mode<synchronous>, transform_indices = @transform_9, window_bounds = array<i64: 32, 32>}, {pipeline_mode = #tpu.pipeline_mode<synchronous>, transform_indices = @transform_10, window_bounds = array<i64: 1, 32>}, {transform_indices = @transform_11, window_bounds = array<i64: 1, 8, 32>}, {transform_indices = @transform_12, window_bounds = array<i64: 1, 8, 8, 8>}]} {
    %c0 = arith.constant 0 : index
    %c0_0 = arith.constant 0 : index
    %c0_1 = arith.constant 0 : index
    %0 = vector.load %arg2[%c0, %c0_0, %c0_1] : memref<1x8x32xf32, #tpu.memory_space<vmem>>, vector<1x8x32xf32>
    %1 = vector.shape_cast %0 : vector<1x8x32xf32> to vector<8x32xf32>
    %c0_2 = arith.constant 0 : index
    %c0_3 = arith.constant 0 : index
    %c0_4 = arith.constant 0 : index
    %2 = vector.load %arg3[%c0_2, %c0_3, %c0_4] : memref<1x8x32xf32, #tpu.memory_space<vmem>>, vector<1x8x32xf32>
    %3 = vector.shape_cast %2 : vector<1x8x32xf32> to vector<8x32xf32>
    %c0_5 = arith.constant 0 : index
    %c0_6 = arith.constant 0 : index
    %c0_7 = arith.constant 0 : index
    %4 = vector.load %arg4[%c0_5, %c0_6, %c0_7] : memref<1x32x8xf32, #tpu.memory_space<vmem>>, vector<1x32x8xf32>
    %5 = vector.shape_cast %4 : vector<1x32x8xf32> to vector<32x8xf32>
    %c0_8 = arith.constant 0 : index
    %c0_9 = arith.constant 0 : index
    %6 = vector.load %arg5[%c0_8, %c0_9] : memref<32x32xf32, #tpu.memory_space<vmem>>, vector<32x32xf32>
    %cst = arith.constant dense<0.000000e+00> : vector<8x32xf32>
    %7 = tpu.matmul %1, %6, %cst {dimension_numbers = #tpu.dot_dimension_numbers<[1], [0], [0], [1], [0, 0, 1, 1], [], []>} : vector<8x32xf32>, vector<32x32xf32>, vector<8x32xf32> -> vector<8x32xf32>
    %c0_10 = arith.constant 0 : index
    %c0_11 = arith.constant 0 : index
    %8 = vector.load %arg6[%c0_10, %c0_11] : memref<1x32xf32, #tpu.memory_space<vmem>>, vector<1x32xf32>
    %9 = vector.broadcast %8 : vector<1x32xf32> to vector<8x32xf32>
    %10 = arith.addf %7, %9 : vector<8x32xf32>
    %cst_12 = arith.constant 5.000000e-01 : f32
    %11 = vector.broadcast %cst_12 : f32 to vector<8x32xf32>
    %12 = arith.mulf %10, %11 : vector<8x32xf32>
    %c0_13 = arith.constant 0 : index
    %c0_14 = arith.constant 0 : index
    %13 = vector.load %arg15[%c0_13, %c0_14] : memref<8x32xf32, #tpu.memory_space<vmem>>, vector<8x32xf32>
    tpu.vector_store %arg15[%c0_13, %c0_14], %12 {strides = array<i32>} : memref<8x32xf32, #tpu.memory_space<vmem>>, vector<8x32xf32>,
    %c0_15 = arith.constant 0 : index
    %c0_16 = arith.constant 0 : index
    %14 = vector.load %arg7[%c0_15, %c0_16] : memref<32x32xf32, #tpu.memory_space<vmem>>, vector<32x32xf32>
    %cst_17 = arith.constant dense<0.000000e+00> : vector<32x8xf32>
    %15 = tpu.matmul %14, %5, %cst_17 {dimension_numbers = #tpu.dot_dimension_numbers<[1], [0], [0], [1], [0, 0, 1, 1], [], []>} : vector<32x32xf32>, vector<32x8xf32>, vector<32x8xf32> -> vector<32x8xf32>
    %c0_18 = arith.constant 0 : index
    %c0_19 = arith.constant 0 : index
    %16 = vector.load %arg8[%c0_18, %c0_19] : memref<32x1xf32, #tpu.memory_space<vmem>>, vector<32x1xf32>
    %17 = vector.broadcast %16 : vector<32x1xf32> to vector<32x8xf32>
    %18 = arith.addf %15, %17 : vector<32x8xf32>
    %c0_20 = arith.constant 0 : index
    %c0_21 = arith.constant 0 : index
    %19 = vector.load %arg16[%c0_20, %c0_21] : memref<32x8xf32, #tpu.memory_space<vmem>>, vector<32x8xf32>
    tpu.vector_store %arg16[%c0_20, %c0_21], %18 {strides = array<i32>} : memref<32x8xf32, #tpu.memory_space<vmem>>, vector<32x8xf32>,
    %c0_22 = arith.constant 0 : index
    %c0_23 = arith.constant 0 : index
    %20 = vector.load %arg9[%c0_22, %c0_23] : memref<32x32xf32, #tpu.memory_space<vmem>>, vector<32x32xf32>
    %cst_24 = arith.constant dense<0.000000e+00> : vector<8x32xf32>
    %21 = tpu.matmul %3, %20, %cst_24 {dimension_numbers = #tpu.dot_dimension_numbers<[1], [0], [0], [1], [0, 0, 1, 1], [], []>} : vector<8x32xf32>, vector<32x32xf32>, vector<8x32xf32> -> vector<8x32xf32>
    %c0_25 = arith.constant 0 : index
    %c0_26 = arith.constant 0 : index
    %22 = vector.load %arg10[%c0_25, %c0_26] : memref<1x32xf32, #tpu.memory_space<vmem>>, vector<1x32xf32>
    %23 = vector.broadcast %22 : vector<1x32xf32> to vector<8x32xf32>
    %24 = arith.addf %21, %23 : vector<8x32xf32>
    %c0_27 = arith.constant 0 : index
    %c0_28 = arith.constant 0 : index
    %25 = vector.load %arg17[%c0_27, %c0_28] : memref<8x32xf32, #tpu.memory_space<vmem>>, vector<8x32xf32>
    tpu.vector_store %arg17[%c0_27, %c0_28], %24 {strides = array<i32>} : memref<8x32xf32, #tpu.memory_space<vmem>>, vector<8x32xf32>,
    %c0_29 = arith.constant 0 : index
    %c0_30 = arith.constant 0 : index
    %26 = vector.load %arg15[%c0_29, %c0_30] : memref<8x32xf32, #tpu.memory_space<vmem>>, vector<8x4xf32>
    %c0_31 = arith.constant 0 : index
    %c0_32 = arith.constant 0 : index
    %27 = vector.load %arg16[%c0_31, %c0_32] : memref<32x8xf32, #tpu.memory_space<vmem>>, vector<4x8xf32>
    %cst_33 = arith.constant dense<0.000000e+00> : vector<8x8xf32>
    %28 = tpu.matmul %26, %27, %cst_33 {dimension_numbers = #tpu.dot_dimension_numbers<[1], [0], [0], [1], [0, 0, 1, 1], [], []>} : vector<8x4xf32>, vector<4x8xf32>, vector<8x8xf32> -> vector<8x8xf32>
    %cst_34 = arith.constant dense<0xFF800000> : vector<8xf32>
    %29 = vector.multi_reduction <maximumf>, %28, %cst_34 [1] : vector<8x8xf32> to vector<8xf32>
    %30 = vector.shape_cast %29 : vector<8xf32> to vector<8x1xf32>
    %31 = vector.broadcast %30 : vector<8x1xf32> to vector<8x8xf32>
    %32 = arith.subf %28, %31 : vector<8x8xf32>
    %33 = math.exp %32 : vector<8x8xf32>
    %cst_35 = arith.constant dense<0.000000e+00> : vector<8xf32>
    %34 = vector.multi_reduction <add>, %33, %cst_35 [1] : vector<8x8xf32> to vector<8xf32>
    %35 = vector.shape_cast %34 : vector<8xf32> to vector<8x1xf32>
    %36 = tpu.reciprocal %35 {approx = true} : vector<8x1xf32> -> vector<8x1xf32>
    %37 = vector.broadcast %36 : vector<8x1xf32> to vector<8x8xf32>
    %38 = arith.mulf %33, %37 : vector<8x8xf32>
    %c0_36 = arith.constant 0 : index
    %c0_37 = arith.constant 0 : index
    %c0_38 = arith.constant 0 : index
    %c0_39 = arith.constant 0 : index
    %39 = vector.load %arg14[%c0_36, %c0_37, %c0_38, %c0_39] : memref<1x8x8x8xf32, #tpu.memory_space<vmem>>, vector<1x1x8x8xf32>
    %40 = vector.shape_cast %39 : vector<1x1x8x8xf32> to vector<8x8xf32>
    %41 = vector.shape_cast %38 : vector<8x8xf32> to vector<1x1x8x8xf32>
    tpu.vector_store %arg14[%c0_36, %c0_37, %c0_38, %c0_39], %41 {strides = array<i32>} : memref<1x8x8x8xf32, #tpu.memory_space<vmem>>, vector<1x1x8x8xf32>,
    %c0_40 = arith.constant 0 : index
    %c0_41 = arith.constant 0 : index
    %42 = vector.load %arg17[%c0_40, %c0_41] : memref<8x32xf32, #tpu.memory_space<vmem>>, vector<8x4xf32>
    %cst_42 = arith.constant dense<0.000000e+00> : vector<8x4xf32>
    %43 = tpu.matmul %38, %42, %cst_42 {dimension_numbers = #tpu.dot_dimension_numbers<[1], [0], [0], [1], [0, 0, 1, 1], [], []>} : vector<8x8xf32>, vector<8x4xf32>, vector<8x4xf32> -> vector<8x4xf32>
    %c0_43 = arith.constant 0 : index
    %c0_44 = arith.constant 0 : index
    %44 = vector.load %arg18[%c0_43, %c0_44] : memref<8x32xf32, #tpu.memory_space<vmem>>, vector<8x4xf32>
    tpu.vector_store %arg18[%c0_43, %c0_44], %43 {strides = array<i32>} : memref<8x32xf32, #tpu.memory_space<vmem>>, vector<8x4xf32>,
    %c0_45 = arith.constant 0 : index
    %c4 = arith.constant 4 : index
    %45 = vector.load %arg15[%c0_45, %c4] : memref<8x32xf32, #tpu.memory_space<vmem>>, vector<8x4xf32>
    %c4_46 = arith.constant 4 : index
    %c0_47 = arith.constant 0 : index
    %46 = vector.load %arg16[%c4_46, %c0_47] : memref<32x8xf32, #tpu.memory_space<vmem>>, vector<4x8xf32>
    %cst_48 = arith.constant dense<0.000000e+00> : vector<8x8xf32>
    %47 = tpu.matmul %45, %46, %cst_48 {dimension_numbers = #tpu.dot_dimension_numbers<[1], [0], [0], [1], [0, 0, 1, 1], [], []>} : vector<8x4xf32>, vector<4x8xf32>, vector<8x8xf32> -> vector<8x8xf32>
    %cst_49 = arith.constant dense<0xFF800000> : vector<8xf32>
    %48 = vector.multi_reduction <maximumf>, %47, %cst_49 [1] : vector<8x8xf32> to vector<8xf32>
    %49 = vector.shape_cast %48 : vector<8xf32> to vector<8x1xf32>
    %50 = vector.broadcast %49 : vector<8x1xf32> to vector<8x8xf32>
    %51 = arith.subf %47, %50 : vector<8x8xf32>
    %52 = math.exp %51 : vector<8x8xf32>
    %cst_50 = arith.constant dense<0.000000e+00> : vector<8xf32>
    %53 = vector.multi_reduction <add>, %52, %cst_50 [1] : vector<8x8xf32> to vector<8xf32>
    %54 = vector.shape_cast %53 : vector<8xf32> to vector<8x1xf32>
    %55 = tpu.reciprocal %54 {approx = true} : vector<8x1xf32> -> vector<8x1xf32>
    %56 = vector.broadcast %55 : vector<8x1xf32> to vector<8x8xf32>
    %57 = arith.mulf %52, %56 : vector<8x8xf32>
    %c0_51 = arith.constant 0 : index
    %c1 = arith.constant 1 : index
    %c0_52 = arith.constant 0 : index
    %c0_53 = arith.constant 0 : index
    %58 = vector.load %arg14[%c0_51, %c1, %c0_52, %c0_53] : memref<1x8x8x8xf32, #tpu.memory_space<vmem>>, vector<1x1x8x8xf32>
    %59 = vector.shape_cast %58 : vector<1x1x8x8xf32> to vector<8x8xf32>
    %60 = vector.shape_cast %57 : vector<8x8xf32> to vector<1x1x8x8xf32>
    tpu.vector_store %arg14[%c0_51, %c1, %c0_52, %c0_53], %60 {strides = array<i32>} : memref<1x8x8x8xf32, #tpu.memory_space<vmem>>, vector<1x1x8x8xf32>,
    %c0_54 = arith.constant 0 : index
    %c4_55 = arith.constant 4 : index
    %61 = vector.load %arg17[%c0_54, %c4_55] : memref<8x32xf32, #tpu.memory_space<vmem>>, vector<8x4xf32>
    %cst_56 = arith.constant dense<0.000000e+00> : vector<8x4xf32>
    %62 = tpu.matmul %57, %61, %cst_56 {dimension_numbers = #tpu.dot_dimension_numbers<[1], [0], [0], [1], [0, 0, 1, 1], [], []>} : vector<8x8xf32>, vector<8x4xf32>, vector<8x4xf32> -> vector<8x4xf32>
    %c0_57 = arith.constant 0 : index
    %c4_58 = arith.constant 4 : index
    %63 = vector.load %arg18[%c0_57, %c4_58] : memref<8x32xf32, #tpu.memory_space<vmem>>, vector<8x4xf32>
    tpu.vector_store %arg18[%c0_57, %c4_58], %62 {strides = array<i32>} : memref<8x32xf32, #tpu.memory_space<vmem>>, vector<8x4xf32>,
    %c0_59 = arith.constant 0 : index
    %c8 = arith.constant 8 : index
    %64 = vector.load %arg15[%c0_59, %c8] : memref<8x32xf32, #tpu.memory_space<vmem>>, vector<8x4xf32>
    %c8_60 = arith.constant 8 : index
    %c0_61 = arith.constant 0 : index
    %65 = vector.load %arg16[%c8_60, %c0_61] : memref<32x8xf32, #tpu.memory_space<vmem>>, vector<4x8xf32>
    %cst_62 = arith.constant dense<0.000000e+00> : vector<8x8xf32>
    %66 = tpu.matmul %64, %65, %cst_62 {dimension_numbers = #tpu.dot_dimension_numbers<[1], [0], [0], [1], [0, 0, 1, 1], [], []>} : vector<8x4xf32>, vector<4x8xf32>, vector<8x8xf32> -> vector<8x8xf32>
    %cst_63 = arith.constant dense<0xFF800000> : vector<8xf32>
    %67 = vector.multi_reduction <maximumf>, %66, %cst_63 [1] : vector<8x8xf32> to vector<8xf32>
    %68 = vector.shape_cast %67 : vector<8xf32> to vector<8x1xf32>
    %69 = vector.broadcast %68 : vector<8x1xf32> to vector<8x8xf32>
    %70 = arith.subf %66, %69 : vector<8x8xf32>
    %71 = math.exp %70 : vector<8x8xf32>
    %cst_64 = arith.constant dense<0.000000e+00> : vector<8xf32>
    %72 = vector.multi_reduction <add>, %71, %cst_64 [1] : vector<8x8xf32> to vector<8xf32>
    %73 = vector.shape_cast %72 : vector<8xf32> to vector<8x1xf32>
    %74 = tpu.reciprocal %73 {approx = true} : vector<8x1xf32> -> vector<8x1xf32>
    %75 = vector.broadcast %74 : vector<8x1xf32> to vector<8x8xf32>
    %76 = arith.mulf %71, %75 : vector<8x8xf32>
    %c0_65 = arith.constant 0 : index
    %c2 = arith.constant 2 : index
    %c0_66 = arith.constant 0 : index
    %c0_67 = arith.constant 0 : index
    %77 = vector.load %arg14[%c0_65, %c2, %c0_66, %c0_67] : memref<1x8x8x8xf32, #tpu.memory_space<vmem>>, vector<1x1x8x8xf32>
    %78 = vector.shape_cast %77 : vector<1x1x8x8xf32> to vector<8x8xf32>
    %79 = vector.shape_cast %76 : vector<8x8xf32> to vector<1x1x8x8xf32>
    tpu.vector_store %arg14[%c0_65, %c2, %c0_66, %c0_67], %79 {strides = array<i32>} : memref<1x8x8x8xf32, #tpu.memory_space<vmem>>, vector<1x1x8x8xf32>,
    %c0_68 = arith.constant 0 : index
    %c8_69 = arith.constant 8 : index
    %80 = vector.load %arg17[%c0_68, %c8_69] : memref<8x32xf32, #tpu.memory_space<vmem>>, vector<8x4xf32>
    %cst_70 = arith.constant dense<0.000000e+00> : vector<8x4xf32>
    %81 = tpu.matmul %76, %80, %cst_70 {dimension_numbers = #tpu.dot_dimension_numbers<[1], [0], [0], [1], [0, 0, 1, 1], [], []>} : vector<8x8xf32>, vector<8x4xf32>, vector<8x4xf32> -> vector<8x4xf32>
    %c0_71 = arith.constant 0 : index
    %c8_72 = arith.constant 8 : index
    %82 = vector.load %arg18[%c0_71, %c8_72] : memref<8x32xf32, #tpu.memory_space<vmem>>, vector<8x4xf32>
    tpu.vector_store %arg18[%c0_71, %c8_72], %81 {strides = array<i32>} : memref<8x32xf32, #tpu.memory_space<vmem>>, vector<8x4xf32>,
    %c0_73 = arith.constant 0 : index
    %c12 = arith.constant 12 : index
    %83 = vector.load %arg15[%c0_73, %c12] : memref<8x32xf32, #tpu.memory_space<vmem>>, vector<8x4xf32>
    %c12_74 = arith.constant 12 : index
    %c0_75 = arith.constant 0 : index
    %84 = vector.load %arg16[%c12_74, %c0_75] : memref<32x8xf32, #tpu.memory_space<vmem>>, vector<4x8xf32>
    %cst_76 = arith.constant dense<0.000000e+00> : vector<8x8xf32>
    %85 = tpu.matmul %83, %84, %cst_76 {dimension_numbers = #tpu.dot_dimension_numbers<[1], [0], [0], [1], [0, 0, 1, 1], [], []>} : vector<8x4xf32>, vector<4x8xf32>, vector<8x8xf32> -> vector<8x8xf32>
    %cst_77 = arith.constant dense<0xFF800000> : vector<8xf32>
    %86 = vector.multi_reduction <maximumf>, %85, %cst_77 [1] : vector<8x8xf32> to vector<8xf32>
    %87 = vector.shape_cast %86 : vector<8xf32> to vector<8x1xf32>
    %88 = vector.broadcast %87 : vector<8x1xf32> to vector<8x8xf32>
    %89 = arith.subf %85, %88 : vector<8x8xf32>
    %90 = math.exp %89 : vector<8x8xf32>
    %cst_78 = arith.constant dense<0.000000e+00> : vector<8xf32>
    %91 = vector.multi_reduction <add>, %90, %cst_78 [1] : vector<8x8xf32> to vector<8xf32>
    %92 = vector.shape_cast %91 : vector<8xf32> to vector<8x1xf32>
    %93 = tpu.reciprocal %92 {approx = true} : vector<8x1xf32> -> vector<8x1xf32>
    %94 = vector.broadcast %93 : vector<8x1xf32> to vector<8x8xf32>
    %95 = arith.mulf %90, %94 : vector<8x8xf32>
    %c0_79 = arith.constant 0 : index
    %c3 = arith.constant 3 : index
    %c0_80 = arith.constant 0 : index
    %c0_81 = arith.constant 0 : index
    %96 = vector.load %arg14[%c0_79, %c3, %c0_80, %c0_81] : memref<1x8x8x8xf32, #tpu.memory_space<vmem>>, vector<1x1x8x8xf32>
    %97 = vector.shape_cast %96 : vector<1x1x8x8xf32> to vector<8x8xf32>
    %98 = vector.shape_cast %95 : vector<8x8xf32> to vector<1x1x8x8xf32>
    tpu.vector_store %arg14[%c0_79, %c3, %c0_80, %c0_81], %98 {strides = array<i32>} : memref<1x8x8x8xf32, #tpu.memory_space<vmem>>, vector<1x1x8x8xf32>,
    %c0_82 = arith.constant 0 : index
    %c12_83 = arith.constant 12 : index
    %99 = vector.load %arg17[%c0_82, %c12_83] : memref<8x32xf32, #tpu.memory_space<vmem>>, vector<8x4xf32>
    %cst_84 = arith.constant dense<0.000000e+00> : vector<8x4xf32>
    %100 = tpu.matmul %95, %99, %cst_84 {dimension_numbers = #tpu.dot_dimension_numbers<[1], [0], [0], [1], [0, 0, 1, 1], [], []>} : vector<8x8xf32>, vector<8x4xf32>, vector<8x4xf32> -> vector<8x4xf32>
    %c0_85 = arith.constant 0 : index
    %c12_86 = arith.constant 12 : index
    %101 = vector.load %arg18[%c0_85, %c12_86] : memref<8x32xf32, #tpu.memory_space<vmem>>, vector<8x4xf32>
    tpu.vector_store %arg18[%c0_85, %c12_86], %100 {strides = array<i32>} : memref<8x32xf32, #tpu.memory_space<vmem>>, vector<8x4xf32>,
    %c0_87 = arith.constant 0 : index
    %c16 = arith.constant 16 : index
    %102 = vector.load %arg15[%c0_87, %c16] : memref<8x32xf32, #tpu.memory_space<vmem>>, vector<8x4xf32>
    %c16_88 = arith.constant 16 : index
    %c0_89 = arith.constant 0 : index
    %103 = vector.load %arg16[%c16_88, %c0_89] : memref<32x8xf32, #tpu.memory_space<vmem>>, vector<4x8xf32>
    %cst_90 = arith.constant dense<0.000000e+00> : vector<8x8xf32>
    %104 = tpu.matmul %102, %103, %cst_90 {dimension_numbers = #tpu.dot_dimension_numbers<[1], [0], [0], [1], [0, 0, 1, 1], [], []>} : vector<8x4xf32>, vector<4x8xf32>, vector<8x8xf32> -> vector<8x8xf32>
    %cst_91 = arith.constant dense<0xFF800000> : vector<8xf32>
    %105 = vector.multi_reduction <maximumf>, %104, %cst_91 [1] : vector<8x8xf32> to vector<8xf32>
    %106 = vector.shape_cast %105 : vector<8xf32> to vector<8x1xf32>
    %107 = vector.broadcast %106 : vector<8x1xf32> to vector<8x8xf32>
    %108 = arith.subf %104, %107 : vector<8x8xf32>
    %109 = math.exp %108 : vector<8x8xf32>
    %cst_92 = arith.constant dense<0.000000e+00> : vector<8xf32>
    %110 = vector.multi_reduction <add>, %109, %cst_92 [1] : vector<8x8xf32> to vector<8xf32>
    %111 = vector.shape_cast %110 : vector<8xf32> to vector<8x1xf32>
    %112 = tpu.reciprocal %111 {approx = true} : vector<8x1xf32> -> vector<8x1xf32>
    %113 = vector.broadcast %112 : vector<8x1xf32> to vector<8x8xf32>
    %114 = arith.mulf %109, %113 : vector<8x8xf32>
    %c0_93 = arith.constant 0 : index
    %c4_94 = arith.constant 4 : index
    %c0_95 = arith.constant 0 : index
    %c0_96 = arith.constant 0 : index
    %115 = vector.load %arg14[%c0_93, %c4_94, %c0_95, %c0_96] : memref<1x8x8x8xf32, #tpu.memory_space<vmem>>, vector<1x1x8x8xf32>
    %116 = vector.shape_cast %115 : vector<1x1x8x8xf32> to vector<8x8xf32>
    %117 = vector.shape_cast %114 : vector<8x8xf32> to vector<1x1x8x8xf32>
    tpu.vector_store %arg14[%c0_93, %c4_94, %c0_95, %c0_96], %117 {strides = array<i32>} : memref<1x8x8x8xf32, #tpu.memory_space<vmem>>, vector<1x1x8x8xf32>,
    %c0_97 = arith.constant 0 : index
    %c16_98 = arith.constant 16 : index
    %118 = vector.load %arg17[%c0_97, %c16_98] : memref<8x32xf32, #tpu.memory_space<vmem>>, vector<8x4xf32>
    %cst_99 = arith.constant dense<0.000000e+00> : vector<8x4xf32>
    %119 = tpu.matmul %114, %118, %cst_99 {dimension_numbers = #tpu.dot_dimension_numbers<[1], [0], [0], [1], [0, 0, 1, 1], [], []>} : vector<8x8xf32>, vector<8x4xf32>, vector<8x4xf32> -> vector<8x4xf32>
    %c0_100 = arith.constant 0 : index
    %c16_101 = arith.constant 16 : index
    %120 = vector.load %arg18[%c0_100, %c16_101] : memref<8x32xf32, #tpu.memory_space<vmem>>, vector<8x4xf32>
    tpu.vector_store %arg18[%c0_100, %c16_101], %119 {strides = array<i32>} : memref<8x32xf32, #tpu.memory_space<vmem>>, vector<8x4xf32>,
    %c0_102 = arith.constant 0 : index
    %c20 = arith.constant 20 : index
    %121 = vector.load %arg15[%c0_102, %c20] : memref<8x32xf32, #tpu.memory_space<vmem>>, vector<8x4xf32>
    %c20_103 = arith.constant 20 : index
    %c0_104 = arith.constant 0 : index
    %122 = vector.load %arg16[%c20_103, %c0_104] : memref<32x8xf32, #tpu.memory_space<vmem>>, vector<4x8xf32>
    %cst_105 = arith.constant dense<0.000000e+00> : vector<8x8xf32>
    %123 = tpu.matmul %121, %122, %cst_105 {dimension_numbers = #tpu.dot_dimension_numbers<[1], [0], [0], [1], [0, 0, 1, 1], [], []>} : vector<8x4xf32>, vector<4x8xf32>, vector<8x8xf32> -> vector<8x8xf32>
    %cst_106 = arith.constant dense<0xFF800000> : vector<8xf32>
    %124 = vector.multi_reduction <maximumf>, %123, %cst_106 [1] : vector<8x8xf32> to vector<8xf32>
    %125 = vector.shape_cast %124 : vector<8xf32> to vector<8x1xf32>
    %126 = vector.broadcast %125 : vector<8x1xf32> to vector<8x8xf32>
    %127 = arith.subf %123, %126 : vector<8x8xf32>
    %128 = math.exp %127 : vector<8x8xf32>
    %cst_107 = arith.constant dense<0.000000e+00> : vector<8xf32>
    %129 = vector.multi_reduction <add>, %128, %cst_107 [1] : vector<8x8xf32> to vector<8xf32>
    %130 = vector.shape_cast %129 : vector<8xf32> to vector<8x1xf32>
    %131 = tpu.reciprocal %130 {approx = true} : vector<8x1xf32> -> vector<8x1xf32>
    %132 = vector.broadcast %131 : vector<8x1xf32> to vector<8x8xf32>
    %133 = arith.mulf %128, %132 : vector<8x8xf32>
    %c0_108 = arith.constant 0 : index
    %c5 = arith.constant 5 : index
    %c0_109 = arith.constant 0 : index
    %c0_110 = arith.constant 0 : index
    %134 = vector.load %arg14[%c0_108, %c5, %c0_109, %c0_110] : memref<1x8x8x8xf32, #tpu.memory_space<vmem>>, vector<1x1x8x8xf32>
    %135 = vector.shape_cast %134 : vector<1x1x8x8xf32> to vector<8x8xf32>
    %136 = vector.shape_cast %133 : vector<8x8xf32> to vector<1x1x8x8xf32>
    tpu.vector_store %arg14[%c0_108, %c5, %c0_109, %c0_110], %136 {strides = array<i32>} : memref<1x8x8x8xf32, #tpu.memory_space<vmem>>, vector<1x1x8x8xf32>,
    %c0_111 = arith.constant 0 : index
    %c20_112 = arith.constant 20 : index
    %137 = vector.load %arg17[%c0_111, %c20_112] : memref<8x32xf32, #tpu.memory_space<vmem>>, vector<8x4xf32>
    %cst_113 = arith.constant dense<0.000000e+00> : vector<8x4xf32>
    %138 = tpu.matmul %133, %137, %cst_113 {dimension_numbers = #tpu.dot_dimension_numbers<[1], [0], [0], [1], [0, 0, 1, 1], [], []>} : vector<8x8xf32>, vector<8x4xf32>, vector<8x4xf32> -> vector<8x4xf32>
    %c0_114 = arith.constant 0 : index
    %c20_115 = arith.constant 20 : index
    %139 = vector.load %arg18[%c0_114, %c20_115] : memref<8x32xf32, #tpu.memory_space<vmem>>, vector<8x4xf32>
    tpu.vector_store %arg18[%c0_114, %c20_115], %138 {strides = array<i32>} : memref<8x32xf32, #tpu.memory_space<vmem>>, vector<8x4xf32>,
    %c0_116 = arith.constant 0 : index
    %c24 = arith.constant 24 : index
    %140 = vector.load %arg15[%c0_116, %c24] : memref<8x32xf32, #tpu.memory_space<vmem>>, vector<8x4xf32>
    %c24_117 = arith.constant 24 : index
    %c0_118 = arith.constant 0 : index
    %141 = vector.load %arg16[%c24_117, %c0_118] : memref<32x8xf32, #tpu.memory_space<vmem>>, vector<4x8xf32>
    %cst_119 = arith.constant dense<0.000000e+00> : vector<8x8xf32>
    %142 = tpu.matmul %140, %141, %cst_119 {dimension_numbers = #tpu.dot_dimension_numbers<[1], [0], [0], [1], [0, 0, 1, 1], [], []>} : vector<8x4xf32>, vector<4x8xf32>, vector<8x8xf32> -> vector<8x8xf32>
    %cst_120 = arith.constant dense<0xFF800000> : vector<8xf32>
    %143 = vector.multi_reduction <maximumf>, %142, %cst_120 [1] : vector<8x8xf32> to vector<8xf32>
    %144 = vector.shape_cast %143 : vector<8xf32> to vector<8x1xf32>
    %145 = vector.broadcast %144 : vector<8x1xf32> to vector<8x8xf32>
    %146 = arith.subf %142, %145 : vector<8x8xf32>
    %147 = math.exp %146 : vector<8x8xf32>
    %cst_121 = arith.constant dense<0.000000e+00> : vector<8xf32>
    %148 = vector.multi_reduction <add>, %147, %cst_121 [1] : vector<8x8xf32> to vector<8xf32>
    %149 = vector.shape_cast %148 : vector<8xf32> to vector<8x1xf32>
    %150 = tpu.reciprocal %149 {approx = true} : vector<8x1xf32> -> vector<8x1xf32>
    %151 = vector.broadcast %150 : vector<8x1xf32> to vector<8x8xf32>
    %152 = arith.mulf %147, %151 : vector<8x8xf32>
    %c0_122 = arith.constant 0 : index
    %c6 = arith.constant 6 : index
    %c0_123 = arith.constant 0 : index
    %c0_124 = arith.constant 0 : index
    %153 = vector.load %arg14[%c0_122, %c6, %c0_123, %c0_124] : memref<1x8x8x8xf32, #tpu.memory_space<vmem>>, vector<1x1x8x8xf32>
    %154 = vector.shape_cast %153 : vector<1x1x8x8xf32> to vector<8x8xf32>
    %155 = vector.shape_cast %152 : vector<8x8xf32> to vector<1x1x8x8xf32>
    tpu.vector_store %arg14[%c0_122, %c6, %c0_123, %c0_124], %155 {strides = array<i32>} : memref<1x8x8x8xf32, #tpu.memory_space<vmem>>, vector<1x1x8x8xf32>,
    %c0_125 = arith.constant 0 : index
    %c24_126 = arith.constant 24 : index
    %156 = vector.load %arg17[%c0_125, %c24_126] : memref<8x32xf32, #tpu.memory_space<vmem>>, vector<8x4xf32>
    %cst_127 = arith.constant dense<0.000000e+00> : vector<8x4xf32>
    %157 = tpu.matmul %152, %156, %cst_127 {dimension_numbers = #tpu.dot_dimension_numbers<[1], [0], [0], [1], [0, 0, 1, 1], [], []>} : vector<8x8xf32>, vector<8x4xf32>, vector<8x4xf32> -> vector<8x4xf32>
    %c0_128 = arith.constant 0 : index
    %c24_129 = arith.constant 24 : index
    %158 = vector.load %arg18[%c0_128, %c24_129] : memref<8x32xf32, #tpu.memory_space<vmem>>, vector<8x4xf32>
    tpu.vector_store %arg18[%c0_128, %c24_129], %157 {strides = array<i32>} : memref<8x32xf32, #tpu.memory_space<vmem>>, vector<8x4xf32>,
    %c0_130 = arith.constant 0 : index
    %c28 = arith.constant 28 : index
    %159 = vector.load %arg15[%c0_130, %c28] : memref<8x32xf32, #tpu.memory_space<vmem>>, vector<8x4xf32>
    %c28_131 = arith.constant 28 : index
    %c0_132 = arith.constant 0 : index
    %160 = vector.load %arg16[%c28_131, %c0_132] : memref<32x8xf32, #tpu.memory_space<vmem>>, vector<4x8xf32>
    %cst_133 = arith.constant dense<0.000000e+00> : vector<8x8xf32>
    %161 = tpu.matmul %159, %160, %cst_133 {dimension_numbers = #tpu.dot_dimension_numbers<[1], [0], [0], [1], [0, 0, 1, 1], [], []>} : vector<8x4xf32>, vector<4x8xf32>, vector<8x8xf32> -> vector<8x8xf32>
    %cst_134 = arith.constant dense<0xFF800000> : vector<8xf32>
    %162 = vector.multi_reduction <maximumf>, %161, %cst_134 [1] : vector<8x8xf32> to vector<8xf32>
    %163 = vector.shape_cast %162 : vector<8xf32> to vector<8x1xf32>
    %164 = vector.broadcast %163 : vector<8x1xf32> to vector<8x8xf32>
    %165 = arith.subf %161, %164 : vector<8x8xf32>
    %166 = math.exp %165 : vector<8x8xf32>
    %cst_135 = arith.constant dense<0.000000e+00> : vector<8xf32>
    %167 = vector.multi_reduction <add>, %166, %cst_135 [1] : vector<8x8xf32> to vector<8xf32>
    %168 = vector.shape_cast %167 : vector<8xf32> to vector<8x1xf32>
    %169 = tpu.reciprocal %168 {approx = true} : vector<8x1xf32> -> vector<8x1xf32>
    %170 = vector.broadcast %169 : vector<8x1xf32> to vector<8x8xf32>
    %171 = arith.mulf %166, %170 : vector<8x8xf32>
    %c0_136 = arith.constant 0 : index
    %c7 = arith.constant 7 : index
    %c0_137 = arith.constant 0 : index
    %c0_138 = arith.constant 0 : index
    %172 = vector.load %arg14[%c0_136, %c7, %c0_137, %c0_138] : memref<1x8x8x8xf32, #tpu.memory_space<vmem>>, vector<1x1x8x8xf32>
    %173 = vector.shape_cast %172 : vector<1x1x8x8xf32> to vector<8x8xf32>
    %174 = vector.shape_cast %171 : vector<8x8xf32> to vector<1x1x8x8xf32>
    tpu.vector_store %arg14[%c0_136, %c7, %c0_137, %c0_138], %174 {strides = array<i32>} : memref<1x8x8x8xf32, #tpu.memory_space<vmem>>, vector<1x1x8x8xf32>,
    %c0_139 = arith.constant 0 : index
    %c28_140 = arith.constant 28 : index
    %175 = vector.load %arg17[%c0_139, %c28_140] : memref<8x32xf32, #tpu.memory_space<vmem>>, vector<8x4xf32>
    %cst_141 = arith.constant dense<0.000000e+00> : vector<8x4xf32>
    %176 = tpu.matmul %171, %175, %cst_141 {dimension_numbers = #tpu.dot_dimension_numbers<[1], [0], [0], [1], [0, 0, 1, 1], [], []>} : vector<8x8xf32>, vector<8x4xf32>, vector<8x4xf32> -> vector<8x4xf32>
    %c0_142 = arith.constant 0 : index
    %c28_143 = arith.constant 28 : index
    %177 = vector.load %arg18[%c0_142, %c28_143] : memref<8x32xf32, #tpu.memory_space<vmem>>, vector<8x4xf32>
    tpu.vector_store %arg18[%c0_142, %c28_143], %176 {strides = array<i32>} : memref<8x32xf32, #tpu.memory_space<vmem>>, vector<8x4xf32>,
    %c0_144 = arith.constant 0 : index
    %c0_145 = arith.constant 0 : index
    %178 = vector.load %arg18[%c0_144, %c0_145] : memref<8x32xf32, #tpu.memory_space<vmem>>, vector<8x32xf32>
    %c0_146 = arith.constant 0 : index
    %c0_147 = arith.constant 0 : index
    %179 = vector.load %arg11[%c0_146, %c0_147] : memref<32x32xf32, #tpu.memory_space<vmem>>, vector<32x32xf32>
    %cst_148 = arith.constant dense<0.000000e+00> : vector<8x32xf32>
    %180 = tpu.matmul %178, %179, %cst_148 {dimension_numbers = #tpu.dot_dimension_numbers<[1], [0], [0], [1], [0, 0, 1, 1], [], []>} : vector<8x32xf32>, vector<32x32xf32>, vector<8x32xf32> -> vector<8x32xf32>
    %c0_149 = arith.constant 0 : index
    %c0_150 = arith.constant 0 : index
    %181 = vector.load %arg12[%c0_149, %c0_150] : memref<1x32xf32, #tpu.memory_space<vmem>>, vector<1x32xf32>
    %182 = vector.broadcast %181 : vector<1x32xf32> to vector<8x32xf32>
    %183 = arith.addf %180, %182 : vector<8x32xf32>
    %c0_151 = arith.constant 0 : index
    %c0_152 = arith.constant 0 : index
    %c0_153 = arith.constant 0 : index
    %184 = vector.load %arg13[%c0_151, %c0_152, %c0_153] : memref<1x8x32xf32, #tpu.memory_space<vmem>>, vector<1x8x32xf32>
    %185 = vector.shape_cast %184 : vector<1x8x32xf32> to vector<8x32xf32>
    %186 = vector.shape_cast %183 : vector<8x32xf32> to vector<1x8x32xf32>
    tpu.vector_store %arg13[%c0_151, %c0_152, %c0_153], %186 {strides = array<i32>} : memref<1x8x32xf32, #tpu.memory_space<vmem>>, vector<1x8x32xf32>,
    return
  }
  func.func @transform_0(%arg0: i32, %arg1: i32) -> (i32, i32, i32) {
    %c0_i32 = arith.constant 0 : i32
    %c0_i32_0 = arith.constant 0 : i32
    return %arg0, %arg1, %c0_i32 : i32, i32, i32
  }
  func.func @transform_1(%arg0: i32, %arg1: i32) -> (i32, i32, i32) {
    %c0_i32 = arith.constant 0 : i32
    %c0_i32_0 = arith.constant 0 : i32
    %c0_i32_1 = arith.constant 0 : i32
    return %arg0, %c0_i32, %c0_i32_0 : i32, i32, i32
  }
  func.func @transform_2(%arg0: i32, %arg1: i32) -> (i32, i32, i32) {
    %c0_i32 = arith.constant 0 : i32
    %c0_i32_0 = arith.constant 0 : i32
    %c0_i32_1 = arith.constant 0 : i32
    return %arg0, %c0_i32, %c0_i32_0 : i32, i32, i32
  }
  func.func @transform_3(%arg0: i32, %arg1: i32) -> (i32, i32) {
    %c0_i32 = arith.constant 0 : i32
    %c0_i32_0 = arith.constant 0 : i32
    %c0_i32_1 = arith.constant 0 : i32
    return %c0_i32, %c0_i32_0 : i32, i32
  }
  func.func @transform_4(%arg0: i32, %arg1: i32) -> (i32, i32) {
    %c0_i32 = arith.constant 0 : i32
    %c0_i32_0 = arith.constant 0 : i32
    %c0_i32_1 = arith.constant 0 : i32
    return %c0_i32, %c0_i32_0 : i32, i32
  }
  func.func @transform_5(%arg0: i32, %arg1: i32) -> (i32, i32) {
    %c0_i32 = arith.constant 0 : i32
    %c0_i32_0 = arith.constant 0 : i32
    %c0_i32_1 = arith.constant 0 : i32
    return %c0_i32, %c0_i32_0 : i32, i32
  }
  func.func @transform_6(%arg0: i32, %arg1: i32) -> (i32, i32) {
    %c0_i32 = arith.constant 0 : i32
    %c0_i32_0 = arith.constant 0 : i32
    %c0_i32_1 = arith.constant 0 : i32
    return %c0_i32, %c0_i32_0 : i32, i32
  }
  func.func @transform_7(%arg0: i32, %arg1: i32) -> (i32, i32) {
    %c0_i32 = arith.constant 0 : i32
    %c0_i32_0 = arith.constant 0 : i32
    %c0_i32_1 = arith.constant 0 : i32
    return %c0_i32, %c0_i32_0 : i32, i32
  }
  func.func @transform_8(%arg0: i32, %arg1: i32) -> (i32, i32) {
    %c0_i32 = arith.constant 0 : i32
    %c0_i32_0 = arith.constant 0 : i32
    %c0_i32_1 = arith.constant 0 : i32
    return %c0_i32, %c0_i32_0 : i32, i32
  }
  func.func @transform_9(%arg0: i32, %arg1: i32) -> (i32, i32) {
    %c0_i32 = arith.constant 0 : i32
    %c0_i32_0 = arith.constant 0 : i32
    %c0_i32_1 = arith.constant 0 : i32
    return %c0_i32, %c0_i32_0 : i32, i32
  }
  func.func @transform_10(%arg0: i32, %arg1: i32) -> (i32, i32) {
    %c0_i32 = arith.constant 0 : i32
    %c0_i32_0 = arith.constant 0 : i32
    %c0_i32_1 = arith.constant 0 : i32
    return %c0_i32, %c0_i32_0 : i32, i32
  }
  func.func @transform_11(%arg0: i32, %arg1: i32) -> (i32, i32, i32) {
    %c0_i32 = arith.constant 0 : i32
    %c0_i32_0 = arith.constant 0 : i32
    return %arg0, %arg1, %c0_i32 : i32, i32, i32
  }
  func.func @transform_12(%arg0: i32, %arg1: i32) -> (i32, i32, i32, i32) {
    %c0_i32 = arith.constant 0 : i32
    %c0_i32_0 = arith.constant 0 : i32
    %c0_i32_1 = arith.constant 0 : i32
    return %arg0, %c0_i32, %arg1, %c0_i32_0 : i32, i32, i32, i32
  }
}

</mosaic_0001>

<bundles_post_ra>
// kernel: tpu_custom_call.1
= control target key start
LH: loop header
LB: loop body
LE: loop exit
PB: predicated region body
PF: predicated region fallthrough
CT: control target
= control target key end

     0   :  { %s3784_s0 = inlined_call_operand.hbm [shape: f32[2,8,32], index: 0, kind: input, shape index: {}]   ;;  %s3785_s1 = inlined_call_operand.hbm [shape: f32[2,8,32], index: 1, kind: input, shape index: {}]   ;;  %s3786_s2 = inlined_call_operand.vmem [shape: f32[2,32,8], index: 2, kind: input, shape index: {}]   ;;  %s3787_s3 = inlined_call_operand.vmem [shape: f32[32,32], index: 3, kind: input, shape index: {}]   ;;  %s3788_s4 = inlined_call_operand.hbm [shape: f32[1,32], index: 4, kind: input, shape index: {}]   ;;  %s3789_s5 = inlined_call_operand.vmem [shape: f32[32,32], index: 5, kind: input, shape index: {}]   ;;  %s3790_s6 = inlined_call_operand.vmem [shape: f32[32,1], index: 6, kind: input, shape index: {}]   ;;  %s3791_s7 = inlined_call_operand.vmem [shape: f32[32,32], index: 7, kind: input, shape index: {}]   ;;  %s3792_s8 = inlined_call_operand.vmem [shape: f32[1,32], index: 8, kind: input, shape index: {}]   ;;  %s3793_s9 = inlined_call_operand.vmem [shape: f32[32,32], index: 9, kind: input, shape index: {}]   ;;  %s3794_s10 = inlined_call_operand.vmem [shape: f32[1,32], index: 10, kind: input, shape index: {}]   ;;  %s3795_s11 = inlined_call_operand.hbm [shape: f32[2,8,32], index: 11, kind: output, shape index: {0}]   ;;  %s3796_s12 = inlined_call_operand.hbm [shape: f32[2,8,8,8], index: 12, kind: output, shape index: {1}]  }
   0x1   :  { %3810 = sst [smem:[#allocation27_spill]] %s3788_s4 }
   0x2   :  { %3811 = sst [smem:[#allocation28_spill]] %s3794_s10 }
   0x3   :  { %3812 = sst [smem:[#allocation29_spill]] %s3795_s11 }
   0x4   :  { %3813 = sst [smem:[#allocation30_spill]] %s3796_s12 }
   0x5   :  { %18 = vsyncpa [#allocation7], 0 }
   0x6   :  { %20 = vsyncpa [#allocation7 + $0x1], 0 }
   0x7   :  { %21 = vsyncpa [#allocation10], 0 }
   0x8   :  { %23 = vsyncpa [#allocation10 + $0x1], 0 }
   0x9   :  { %24 = vsyncpa [#allocation8], 0 }
   0xa   :  { %26 = vsyncpa [#allocation8 + $0x1], 0 }
   0xb   :  { %27 = vsyncpa [#allocation14], 0 }
   0xc   :  { %29 = vsyncpa [#allocation14 + $0x1], 0  ;;  %s3235_s21 = smov 0   ;;  %s3237_s22 = smov 0  }
   0xd   :  { %s3239_s23 = smov 0   ;;  %s3241_s24 = smov 0  }
   0xe   :  { %s3243_s25 = smov 0   ;;  %s3245_s26 = smov 0  }
   0xf LB: > { %3814 = sst [smem:[#allocation20_spill]] %s3124_s21  ;;  %s3266_s27 = sadd.s32 4294967295, %s3144_s26   ;;  %s3144_s26 = sphi %s3245_s26, %s35_s26   ;;  %s3140_s25 = sphi %s3243_s25, %s3849_s25   ;;  %s3136_s24 = sphi %s3241_s24, %s3848_s24   ;;  %s3132_s23 = sphi %s3239_s23, %s3847_s23   ;;  %s3128_s22 = sphi %s3237_s22, %s3851_s22   ;;  %s3124_s21 = sphi %s3235_s21, %s3850_s21  }
  0x10   : > { %3815 = sst [smem:[#allocation21_spill]] %s3132_s23  ;;  %s2524_s28 = sadd.s32 4294967294, %s3144_s26  }
  0x11   : > { %3816 = sst [smem:[#allocation22_spill]] %s3140_s25  ;;  %p69_p0 = scmp.ne.s32.totalorder %s3128_s22, %s3124_s21 }
  0x12   : > { %p3800_p1 = scmp.eq.s32.totalorder %s3266_s27, 0  ;;  %p321_p3 = scmp.eq.s32.totalorder %s2524_s28, 1 }
  0x13   : > { %p2525_p5 = scmp.ge.s32.totalorder %s3144_s26, 1  ;;  %p356_p7 = scmp.lt.s32.totalorder %s3144_s26, 3 }
  0x14   : > { %p3275_p4 = por %p3800_p1, %p69_p0  ;;  %p3280_p6 = por %p321_p3, %p69_p0 }
  0x15   : > { %p3285_p8 = pnand %p2525_p5, %p356_p7  ;;  %s3146_s14 = smov [#allocation11]  }
  0x16   : > { %s3817_s29 = scalar_select %p3275_p4, 1, 0 }
  0x17   : > { %s3818_s30 = scalar_select %p3280_p6, 1, 0 }
  0x18   : > { %s3820_s13 = scalar_select %p3285_p8, 1, 0 }
  0x19   : > { %3819 = sst [smem:[#allocation23_spill]] %s3818_s30  ;;  %s372_s15 = sshll.u32 %s3146_s14, 4  ;;  %s373_s15 = int_to_ptr.vmem [resolvable:$true] %s372_s15 }
  0x1a   : > { %p2810_p10 = pneg %p3285_p8  ;;  %s47_s17 = sadd.s32 1, %s3140_s25 }
  0x1b   : > { %p3300_p12 = scmp.ge.s32.totalorder %s47_s17, 2  ;;  %s3823_s4 = sld [smem:[#allocation27_spill]] }
  0x1c   : > { %p3294_p11 = pnand %p2810_p10, %p3800_p1 }
  0x1d   : > { %s3822_s19 = scalar_select %p3300_p12, 1, 0 }
  0x1e   : > { %p2936_p0 = pneg %p3294_p11 }
  0x21   : > { %s2934_s14 = scalar_lea.hbm %s3823_s4, 16 }
  0x22   : > { %p2935_p13 = scmp.ne.s32.totalorder %s3823_s4, %s2934_s14  ;;  %p2941_p7 = scmp.lt.u32.totalorder %s2934_s14, %s3823_s4 }
  0x24   : > { %p2937_p3 = pnand %p2936_p0, %p2935_p13 }
  0x26   : > { %p2938_p5 = pneg %p2937_p3 }
  0x28   : > { %p2943_p10 = pnand %p2941_p7, %p2938_p5 }
  0x2a   : > { %2946 = shalt.err (!%p2943_p10)
}
  0x2b   : > { %s2947_s18 = scalar_lea.vmem %s373_s15, 16  ;;  %s2954_s20 = scalar_lea.vmem %s373_s15, 32 }
  0x2c   : > { %p2948_p9 = scmp.ne.s32.totalorder %s373_s15, %s2947_s18  ;;  %p2955_p6 = scmp.lt.s32.totalorder %s373_s15, %s373_s15 }
  0x2d   : > { %p2956_p4 = scmp.lt.s32.totalorder %s2954_s20, %s2947_s18 }
  0x2e   : > { %p2950_p1 = pnand %p2948_p9, %p2936_p0 }
  0x2f   : > { %p2957_p8 = por %p2956_p4, %p2955_p6 }
  0x30   : > { %p2951_p2 = pneg %p2950_p1 }
  0x32   : > { %p2958_p12 = pnand %p2957_p8, %p2951_p2 }
  0x34   : > { %2961 = shalt.err (!%p2958_p12)
}
  0x35   : > { %2813 = dma.hbm_to_vmem [thread:$0]  (!%p3294_p11), %s3823_s4, 16, %s373_s15, [#allocation10]  }
  0x36   : > { %p3824_p1 = scmp.ne.s32.totalorder %s3822_s19, 0  ;;  %p63_p2 = scmp.ne.s32.totalorder %s3132_s23, %s3128_s22 }
  0x37   : > { %p64_p4 = scmp.eq.s32.totalorder %s3144_s26, 0  ;;  %p2829_p6 = scmp.lt.s32.totalorder %s3144_s26, 2 }
  0x38   : > { %s3853_s17 = smov (%p3824_p1, %s47_s17), 0  ;;  %p3826_p12 = scmp.eq.s32.totalorder %s3266_s27, 1 }
  0x39   : > { %3825 = sst [smem:[#allocation24_spill]] %s3853_s17  ;;  %s51_s10 = ssub.s32 %s3140_s25, %s3853_s17 }
  0x3a   : > { %p54_p8 = scmp.eq.s32.totalorder %s51_s10, 0  ;;  %p65_p9 = por %p64_p4, %p63_p2 }
  0x3b   : > { %p3332_p13 = por %p3826_p12, %p63_p2  ;;  %s401_s16 = sand.u32 1, %s3132_s23  }
  0x3c   : > { %s3829_s18 = sadd.s32 1, %s3132_s23  ;;  %s3342_s15 = sshll.u32 %s401_s16, 3 }
  0x3d   : > { %s3827_s11 = scalar_select %p3332_p13, 1, 0 }
  0x3e   : > { %s3340_s28 = scalar_select %p54_p8, %s3132_s23, %s3829_s18  }
  0x3f   : > { %3828 = sst [smem:[#allocation25_spill]] %s3827_s11  ;;  %s2529_s19 = sshll.u32 %s3140_s25, 7 }
  0x40   : > { %3830 = sst [smem:[#allocation26_spill]] %s3340_s28  ;;  %s3348_s21 = scalar_lea.hbm %s3784_s0, %s2529_s19 }
  0x41   : > { %s405_s30 = scalar_lea.vmem [#allocation6], %s3342_s15  ;;  %p3353_p11 = pnand %p2829_p6, %p65_p9 }
  0x42   : > { %s413_s10 = sshll.u32 %s405_s30, 4  ;;  %s3360_s14 = scalar_lea.hbm %s3785_s1, %s2529_s19  ;;  %s3351_s10 = int_to_ptr.vmem [resolvable:$true] %s413_s10 }
  0x43   : > { %s420_s20 = sand.u32 1, %s3144_s26   ;;  %s402_s25 = scalar_lea.sflag [#allocation7], %s401_s16 }
  0x44   : > { %s2962_s28 = scalar_lea.hbm %s3348_s21, 128  ;;  %p2964_p3 = pneg %p3353_p11 }
  0x45   : > { %p2963_p0 = scmp.ne.s32.totalorder %s3348_s21, %s2962_s28  ;;  %s2967_s12 = scalar_lea.hbm %s3784_s0, 256 }
  0x46   : > { %p2968_p10 = scmp.lt.u32.totalorder %s3348_s21, %s3784_s0  ;;  %p2969_p1 = scmp.lt.u32.totalorder %s2967_s12, %s2962_s28 }
  0x47   : > { %p2965_p5 = pnand %p2964_p3, %p2963_p0  ;;  %p2971_p4 = scmp.lt.u32.totalorder %s2962_s28, %s3348_s21 }
  0x48   : > { %p2970_p2 = por %p2969_p1, %p2968_p10 }
  0x49   : > { %p2966_p7 = pneg %p2965_p5 }
  0x4a   : > { %p2972_p6 = por %p2971_p4, %p2970_p2 }
  0x4c   : > { %p2973_p8 = pnand %p2972_p6, %p2966_p7 }
  0x4e   : > { %2976 = shalt.err (!%p2973_p8)
}
  0x4f   : > { %s2977_s17 = scalar_lea.vmem %s3351_s10, 128  ;;  %s3147_s23 = smov [#allocation6]  }
  0x50   : > { %p2978_p9 = scmp.ne.s32.totalorder %s3351_s10, %s2977_s17  ;;  %s2982_s16 = sshll.u32 %s3147_s23, 4  ;;  %s2983_s16 = int_to_ptr.vmem [resolvable:$false] %s2982_s16 }
  0x51   : > { %s2984_s11 = scalar_lea.vmem %s2983_s16, 256  ;;  %p2985_p5 = scmp.lt.s32.totalorder %s3351_s10, %s2983_s16 }
  0x52   : > { %p2980_p12 = pnand %p2978_p9, %p2964_p3  ;;  %p2986_p10 = scmp.lt.s32.totalorder %s2984_s11, %s2977_s17 }
  0x54   : > { %p2981_p0 = pneg %p2980_p12  ;;  %p2987_p1 = por %p2986_p10, %p2985_p5 }
  0x56   : > { %p2988_p2 = pnand %p2987_p1, %p2981_p0 }
  0x58   : > { %2991 = shalt.err (!%p2988_p2)
}
  0x59   : > { %2817 = dma.hbm_to_vmem [thread:$0]  (!%p3353_p11), %s3348_s21, 128, %s3351_s10, %s402_s25  }
  0x5a   : > { %s424_s12 = scalar_lea.vmem [#allocation9], %s3342_s15  ;;  %s421_s19 = scalar_lea.sflag [#allocation10], %s420_s20 }
  0x5b   : > { %s431_s28 = sshll.u32 %s424_s12, 4  ;;  %s2992_s30 = scalar_lea.hbm %s3360_s14, 128  ;;  %s432_s28 = int_to_ptr.vmem [resolvable:$true] %s431_s28 }
  0x5c   : > { %p2993_p7 = scmp.ne.s32.totalorder %s3360_s14, %s2992_s30  ;;  %s2997_s23 = scalar_lea.hbm %s3785_s1, 256 }
  0x5d   : > { %p2998_p8 = scmp.lt.u32.totalorder %s3360_s14, %s3785_s1  ;;  %p2999_p9 = scmp.lt.u32.totalorder %s2997_s23, %s2992_s30 }
  0x5e   : > { %p2995_p4 = pnand %p2993_p7, %p2964_p3  ;;  %p3001_p0 = scmp.lt.u32.totalorder %s2992_s30, %s3360_s14 }
  0x5f   : > { %p3000_p12 = por %p2999_p9, %p2998_p8 }
  0x60   : > { %p2996_p6 = pneg %p2995_p4 }
  0x61   : > { %p3002_p5 = por %p3001_p0, %p3000_p12 }
  0x63   : > { %p3003_p10 = pnand %p3002_p5, %p2996_p6 }
  0x65   : > { %3006 = shalt.err (!%p3003_p10)
}
  0x66   : > { %s3007_s25 = scalar_lea.vmem %s432_s28, 128  ;;  %s3148_s15 = smov [#allocation9]  }
  0x67   : > { %p3008_p1 = scmp.ne.s32.totalorder %s432_s28, %s3007_s25  ;;  %s3012_s21 = sshll.u32 %s3148_s15, 4  ;;  %s3013_s21 = int_to_ptr.vmem [resolvable:$false] %s3012_s21 }
  0x68   : > { %s3014_s10 = scalar_lea.vmem %s3013_s21, 256  ;;  %p3015_p4 = scmp.lt.s32.totalorder %s432_s28, %s3013_s21 }
  0x69   : > { %p3010_p2 = pnand %p3008_p1, %p2964_p3  ;;  %p3016_p13 = scmp.lt.s32.totalorder %s3014_s10, %s3007_s25 }
  0x6b   : > { %p3011_p7 = pneg %p3010_p2  ;;  %p3017_p8 = por %p3016_p13, %p3015_p4 }
  0x6d   : > { %p3018_p9 = pnand %p3017_p8, %p3011_p7 }
  0x6f   : > { %3021 = shalt.err (!%p3018_p9)
}
  0x70   : > { %2820 = dma.hbm_to_vmem [thread:$0]  (!%p3353_p11), %s3360_s14, 128, %s432_s28, %s421_s19  }
  0x71   : > { %p3832_p6 = scmp.ne.s32.totalorder %s3820_s13, 0 }
  0x72   : > { %s3413_s20 = sand.u32 (!%p3832_p6), 1, %s3128_s22   ;;  %p3833_p13 = scmp.ne.s32.totalorder (!%p3832_p6), %s3817_s29, 0 }
  0x73   : > { %448 = sbr.rel (%p3832_p6) target bundleno = 1638 (0x666), region = 64  ;;  %s3416_s12 = sshll.u32 (!%p3832_p6), %s3413_s20, 3 }
  0x74   : > { %s451_s30 = scalar_lea.sflag (!%p3832_p6), [#allocation7], %s3413_s20  ;;  %s454_s4 = scalar_lea.vmem (!%p3832_p6), [#allocation6], %s3416_s12 }
  0x7a   : > { %3103 = dma.done.wait (%p3833_p13), %s451_s30, 128  }
  0x7b   : > { %3105 = vsyncadd (%p3833_p13), %s451_s30, 4294967168  ;;  %s459_s13 = sand.u32 1, %s3266_s27   ;;  %s463_s14 = scalar_lea.vmem [#allocation9], %s3416_s12 }
  0x7c   : > { %s460_s18 = scalar_lea.sflag [#allocation10], %s459_s13 }
  0x7d   : > { %3107 = dma.done.wait (%p3833_p13), %s460_s18, 128  }
  0x7e   : > { %3109 = vsyncadd (%p3833_p13), %s460_s18, 4294967168  ;;  %p3834_p11 = scmp.eq.s32.totalorder %s3266_s27, 0 }
  0x80   : > { %3111 = dma.done.wait (%p3834_p11), [#allocation10], 16   ;;  %p3835_p3 = pmov %p3834_p11 }
  0x81   : > { %p523_p12 = scmp.lt.s32.totalorder %s3136_s24, 1  ;;  %v3149_v0 = vmov 0.0|0.0   ;;  %vm3150_vm0 = vmmov 0   ;;  %v3151_v1 = vmov 0.0   ;;  %v3152_v2 = vmov 0   ;;  %v534_v3 = vld [vmem:[%s3787_s3] sm:$0xff] }
  0x82   : > { %3113 = vsyncadd (%p3835_p3), [#allocation10], 4294967280  ;;  %2772 = vmatprep.subr.bf16.mxu0 %v3149_v0  ;;  %2653 = vmatprep.mubr.msk.f32.mxu0 %vm3150_vm0, %v3151_v1  ;;  %v535_v4 = vld [vmem:[%s3787_s3 + $0x8] sm:$0xff]  ;;  %v536_v8 = vld [vmem:[%s3787_s3 + $0x10] sm:$0xff]  ;;  %vm545_vm1 = vcmask 261120   ;;  %vm746_vm2 = vcmask 64512  }
  0x83   : > { %s524_s28 = scalar_select %p523_p12, %s3136_s24, 1  ;;  %2900 = vset.pattern.permute.xlu0 %v3152_v2  ;;  %2901 = vset.pattern.permute.xlu1 %v3152_v2  ;;  %v2773_v6 = vpack.c.bf16 %v535_v4, %v534_v3  ;;  %v537_v9 = vld [vmem:[%s3787_s3 + $0x18] sm:$0xff]  ;;  %v621_v15 = vld [vmem:[%s3789_s5] sm:$0xff]  ;;  %v627_v17 = vld [vmem:[%s3790_s6 + $0x10] sm:$0xff]  ;;  %vm842_vm3 = vcmask 1043456   ;;  %vm838_vm4 = vcmask 31744  }
  0x84   : > { %v2776_v13 = vpack.c.bf16 %v537_v9, %v536_v8  ;;  %v625_v16 = vld [vmem:[%s3790_s6] sm:$0xff]  ;;  %2664 = vmatprep.mubr.msk.f32.mxu1 %vm545_vm1, %v621_v15  ;;  %v626_v19 = vld [vmem:[%s3790_s6 + $0x8] sm:$0xff]  ;;  %641 = vperm.xlu1 %2901, %v627_v17   ;;  %v623_v21 = vld [vmem:[%s3789_s5 + $0x10] sm:$0xff]  ;;  %s3153_s13 = smov 116   ;;  %s3154_s18 = smov 124   ;;  %vm1178_vm5 = vcmask 64544  }
  0x85   : > { %s2588_s29 = sshll.u32 %s524_s28, 5  ;;  %2774 = vmatpush3.bf16.msra.mxu0 %v2773_v6  ;;  %631 = vperm.xlu0 %2900, %v625_v16   ;;  %v528_v18 = vld [vmem:[%s454_s4] sm:$0xff]  ;;  %v622_v20 = vld [vmem:[%s3789_s5 + $0x8] sm:$0xff]  ;;  %s3156_s23 = smov 120   ;;  %v753_v47 = vld [vmem:[%s3791_s7 + $0x10] sm:$0xff]  ;;  %vm1355_vm6 = vcmask 97344  }
  0x86   : > { %s527_s27 = scalar_lea.vmem %s3786_s2, %s2588_s29  ;;  %2775 = vmatprep.subr.bf16.mxu0 %v3149_v0  ;;  %v628_v22 = vld [vmem:[%s3790_s6 + $0x18] sm:$0xff]  ;;  %v751_v44 = vld [vmem:[%s3791_s7] sm:$0xff]  ;;  %v752_v45 = vld [vmem:[%s3791_s7 + $0x8] sm:$0xff]  ;;  %s3157_s4 = smov 100   ;;  %vm1532_vm7 = vcmask 130144   ;;  %vm1709_vm8 = vcmask 162944  }
  0x87   : > { %v530_v5 = vld [vmem:[%s527_s27] sm:$0xff]  ;;  %v531_v7 = vld [vmem:[%s527_s27 + $0x8] sm:$0xff]  ;;  %v532_v11 = vld [vmem:[%s527_s27 + $0x10] sm:$0xff]  ;;  %v2787_v46 = vpack.c.bf16 %v752_v45, %v751_v44  ;;  %s3158_s21 = smov 112   ;;  %s3159_s10 = smov 104   ;;  %vm1886_vm9 = vcmask 195744  }
  0x88   : > { %v2778_v10 = vpack.c.bf16 %v531_v7, %v530_v5  ;;  %v533_v12 = vld [vmem:[%s527_s27 + $0x18] sm:$0xff]  ;;  %s3155_s27 = smov 108   ;;  %v529_v50 = vld [vmem:[%s463_s14] sm:$0xff]  ;;  %v2546_v5 = vld [vmem:[%s3792_s8] ss:$0 sm:$0xff]  ;;  %s3160_s28 = smov 4  }
  0x89   : > { %v2782_v14 = vpack.c.bf16 %v533_v12, %v532_v11  ;;  %2777 = vmatpush3.bf16.msra.mxu0 %v2776_v13  ;;  %636 = vperm.xlu0 %2900, %v626_v19   ;;  %v624_v23 = vld [vmem:[%s3789_s5 + $0x18] sm:$0xff]  ;;  %s3161_s29 = smov 8   ;;  %s3162_s19 = smov 12   ;;  %vm2063_vm10 = vcmask 228544   ;;  %vm2240_vm11 = vcmask 261344  }
  0x8a   : > { %2779 = vmatprep.subr.bf16.mxu1 %v2778_v10  ;;  %2786 = vmatprep.subr.bf16.mxu0 %v3149_v0  ;;  %v2540_v25 = vld [vmem:[#allocation11] ss:$0 sm:$0xff]  ;;  %s3165_s14 = smov 24   ;;  %s3166_s30 = smov 28  }
  0x8b   : > { %2781 = vmatpush3.bf16.msra.mxu1 %v2778_v10  ;;  %v754_v48 = vld [vmem:[%s3791_s7 + $0x18] sm:$0xff]  ;;  %s2334_s25 = scalar_lea.sflag [#allocation14], %s3413_s20 }
  0x8c   : > { %2783 = vmatprep.subr.bf16.mxu1 %v2782_v14  ;;  %2654 = vmatmul.mubr.msk.f32.vlgmr.msra.gmra.mrb[0].mxu0 %vm545_vm1, %v528_v18  ;;  %v2790_v49 = vpack.c.bf16 %v754_v48, %v753_v47 }
  0x8d   : > { %2678 = vmatprep.mubr.msk.f32.mxu0 %vm3150_vm0, %v3151_v1  ;;  %646 = vperm.xlu0 %2900, %v628_v22  }
  0x8e   : > { %2788 = vmatpush3.bf16.msra.mxu0 %v2787_v46 }
  0x8f   : > { %2785 = vmatpush3.bf16.msra.mxu1 %v2782_v14  ;;  %2789 = vmatprep.subr.bf16.mxu0 %v3149_v0 }
  0x90   : > { %2681 = vmatprep.subr.mxu1 %v3151_v1 }
  0x92   : > { %2665 = vmatmul.mubr.msk.f32.vlgmr.msra.gmra.mrb[0].mxu1 %vm545_vm1, %v622_v20  ;;  %2791 = vmatpush3.bf16.msra.mxu0 %v2790_v49 }
  0x93   : > { %2667 = vmatprep.mubr.msk.f32.mxu1 %vm545_vm1, %v623_v21  ;;  %2686 = vmatprep.subr.mxu0 %v3151_v1 }
  0x95   : > { %2679 = vmatmul.mubr.msk.f32.vlgmr.msra.gmra.mrb[2].mxu0 %vm545_vm1, %v529_v50 }
  0x96   : > { %2668 = vmatmul.mubr.msk.f32.gmra.mrb[2].mxu1 %vm545_vm1, %v624_v23  ;;  %2688 = vmatprep.mubr.msk.f32.mxu0 %vm3150_vm0, %v3151_v1 }
  0x97   : > { %2683 = vmatprep.mubr.msk.f32.mxu1 %vm3150_vm0, %v3151_v1 }
 0x103   : > { %v642_v36 = vpop.permute.xlu1 %641 }
 0x104   : > { %v632_v24 = vpop.permute.xlu0 %631 }
 0x108   : > { %v637_v26 = vpop.permute.xlu0 %636 }
 0x10c   : > { %v647_v35 = vpop.permute.xlu0 %646 }
 0x15f   : > { %v615_v27 = vpop.f32.mrb[0].mxu0 }
 0x160   : > { %v616_v28 = vadd.f32 %v2540_v25, %v615_v27  ;;  %v2655_v29 = vpop.f32.mrb[1].mxu0 }
 0x162   : > { %v619_v31 = vmul.f32 0.5, %v616_v28 }
 0x164   : > { %620 = vst.msk [vmem:[#allocation2] sm:$0xff] %vm545_vm1, %v619_v31 }
 0x165   : > { %v2666_v30 = vpop.f32.mrb[0].mxu1 }
 0x166   : > { %v727_v32 = vpop.f32.mrb[1].mxu1  ;;  %v733_v33 = vadd.f32 %v2666_v30, %v637_v26 }
 0x167   : > { %v728_v34 = vadd.f32 %v727_v32, %v632_v24 }
 0x168   : > { %748 = vst.msk [vmem:[#allocation3 + $0x8] sm:$0xff] %vm746_vm2, %v733_v33  ;;  %v831_v6 = vpop.f32.mrb[2].mxu0 }
 0x169   : > { %747 = vst.msk [vmem:[#allocation3] sm:$0xff] %vm746_vm2, %v728_v34  ;;  %v2669_v37 = vpop.f32.mrb[2].mxu1  ;;  %v832_v7 = vadd.f32 %v2546_v5, %v831_v6  ;;  %v2680_v8 = vpop.f32.mrb[3].mxu0 }
 0x16a   : > { %v743_v38 = vadd.f32 %v2669_v37, %v647_v35  ;;  %v737_v39 = vpop.f32.mrb[3].mxu1 }
 0x16b   : > { %v738_v40 = vadd.f32 %v737_v39, %v642_v36  ;;  %v1357_v41 = vld [vmem:[#allocation2] sm:$0xff]  ;;  %835 = vst.msk [vmem:[#allocation4] sm:$0xff] %vm545_vm1, %v832_v7 }
 0x16c   : > { %750 = vst.msk [vmem:[#allocation3 + $0x18] sm:$0xff] %vm746_vm2, %v743_v38  ;;  %1360 = vrot.lane.b32.xlu0 %v1357_v41, %s3153_s13  ;;  %1006 = vrot.lane.b32.xlu1 %v1357_v41, %s3154_s18 }
 0x16d   : > { %749 = vst.msk [vmem:[#allocation3 + $0x10] sm:$0xff] %vm746_vm2, %v738_v40 }
 0x16f   : > { %v1181_v52 = vld [vmem:[#allocation3 + $0x8] sm:$0xf]  ;;  %v1358_v54 = vld [vmem:[#allocation3 + $0xc] sm:$0xf] }
 0x170   : > { %v837_v42 = vld [vmem:[#allocation3] sm:$0xf]  ;;  %v1004_v43 = vld [vmem:[#allocation3 + $0x4] sm:$0xf]  ;;  %1714 = vrot.lane.b32.xlu0 %v1357_v41, %s3155_s27  ;;  %1183 = vrot.lane.b32.xlu1 %v1357_v41, %s3156_s23 }
 0x171   : > { %2682 = vmatpush3.msk.msra.mxu1 %vm842_vm3, %v837_v42 }
 0x172   : > { %2684 = vmatmul.mubr.msk.f32.vlgmr.msra.gmra.mrb[4].mxu1 %vm838_vm4, %v1357_v41  ;;  %2691 = vmatprep.subr.mxu1 %v3151_v1  ;;  %v3568_v9 = vld [vmem:[#allocation4] sm:$0xff] }
 0x173   : > { %2692 = vmatpush3.msk.msra.mxu1 %vm842_vm3, %v1004_v43  ;;  %2693 = vmatprep.mubr.msk.f32.mxu1 %vm3150_vm0, %v3151_v1  ;;  %v1889_v60 = vld [vmem:[#allocation3 + $0x18] sm:$0xf]  ;;  %v2066_v62 = vld [vmem:[#allocation3 + $0x1c] sm:$0xf] }
 0x174   : > { %2701 = vmatprep.subr.mxu1 %v3151_v1  ;;  %2068 = vrot.lane.b32.xlu0 %v1357_v41, %s3157_s4  ;;  %v1535_v56 = vld [vmem:[#allocation3 + $0x10] sm:$0xf]  ;;  %v1712_v58 = vld [vmem:[#allocation3 + $0x14] sm:$0xf] }
 0x175   : > { %1537 = vrot.lane.b32.xlu1 %v1357_v41, %s3158_s21  ;;  %2687 = vmatpush3.msra.mxu0 %v3568_v9 }
 0x176   : > { %2696 = vmatprep.subr.mxu0 %v3151_v1 }
 0x179   : > { %1891 = vrot.lane.b32.xlu1 %v1357_v41, %s3159_s10 }
 0x1de   : > { %v1007_v51 = vpop.permute.xlu1 %1006  ;;  %v1361_v55 = vpop.permute.xlu0 %1360 }
 0x1df   : > { %2694 = vmatmul.mubr.msk.f32.vlgmr.msra.gmra.mrb[6].mxu1 %vm838_vm4, %v1007_v51 }
 0x1e0   : > { %2702 = vmatpush3.msk.msra.mxu1 %vm842_vm3, %v1181_v52  ;;  %2703 = vmatprep.mubr.msk.f32.mxu1 %vm3150_vm0, %v3151_v1 }
 0x1e1   : > { %2711 = vmatprep.subr.mxu1 %v3151_v1 }
 0x1e2   : > { %v1184_v53 = vpop.permute.xlu1 %1183  ;;  %v1715_v59 = vpop.permute.xlu0 %1714 }
 0x1e3   : > { %2704 = vmatmul.mubr.msk.f32.vlgmr.msra.gmra.mrb[8].mxu1 %vm838_vm4, %v1184_v53 }
 0x1e4   : > { %2712 = vmatpush3.msk.msra.mxu1 %vm842_vm3, %v1358_v54  ;;  %2713 = vmatprep.mubr.msk.f32.mxu1 %vm3150_vm0, %v3151_v1 }
 0x1e5   : > { %2721 = vmatprep.subr.mxu1 %v3151_v1 }
 0x1e6   : > { %v2069_v63 = vpop.permute.xlu0 %2068 }
 0x1e7   : > { %2714 = vmatmul.mubr.msk.f32.vlgmr.msra.gmra.mrb[10].mxu1 %vm838_vm4, %v1361_v55  ;;  %v1538_v57 = vpop.permute.xlu1 %1537 }
 0x1e8   : > { %2722 = vmatpush3.msk.msra.mxu1 %vm842_vm3, %v1535_v56  ;;  %2723 = vmatprep.mubr.msk.f32.mxu1 %vm3150_vm0, %v3151_v1 }
 0x1e9   : > { %2731 = vmatprep.subr.mxu1 %v3151_v1 }
 0x1eb   : > { %2724 = vmatmul.mubr.msk.f32.vlgmr.msra.gmra.mrb[12].mxu1 %vm838_vm4, %v1538_v57  ;;  %v1892_v61 = vpop.permute.xlu1 %1891 }
 0x1ec   : > { %2732 = vmatpush3.msk.msra.mxu1 %vm842_vm3, %v1712_v58  ;;  %2733 = vmatprep.mubr.msk.f32.mxu1 %vm3150_vm0, %v3151_v1 }
 0x1ed   : > { %2741 = vmatprep.subr.mxu1 %v3151_v1 }
 0x1ef   : > { %2734 = vmatmul.mubr.msk.f32.vlgmr.msra.gmra.mrb[14].mxu1 %vm838_vm4, %v1715_v59 }
 0x1f0   : > { %2742 = vmatpush3.msk.msra.mxu1 %vm842_vm3, %v1889_v60  ;;  %2743 = vmatprep.mubr.msk.f32.mxu1 %vm3150_vm0, %v3151_v1 }
 0x1f1   : > { %2751 = vmatprep.subr.mxu1 %v3151_v1 }
 0x1f3   : > { %2744 = vmatmul.mubr.msk.f32.vlgmr.msra.gmra.mrb[16].mxu1 %vm838_vm4, %v1892_v61 }
 0x1f4   : > { %2752 = vmatpush3.msk.msra.mxu1 %vm842_vm3, %v2066_v62  ;;  %2753 = vmatprep.mubr.msk.f32.mxu1 %vm3150_vm0, %v3151_v1 }
 0x1f5   : > { %2792 = vmatprep.subr.bf16.mxu1 %v3149_v0 }
 0x1f7   : > { %2754 = vmatmul.mubr.msk.f32.vlgmr.msra.gmra.mrb[18].mxu1 %vm838_vm4, %v2069_v63 }
 0x1f8   : > { %2769 = vmatprep.mubr.msk.f32.mxu1 %vm3150_vm0, %v3151_v1 }
 0x245   : > { %v912_v2 = vpop.f32.mrb[4].mxu1 }
 0x246   : > { %v2685_v3 = vpop.f32.mrb[5].mxu1  ;;  %v916_v4 = vsel %vm746_vm2, %v912_v2, -inf }
 0x247   : > { %917 = vmax.xlane.f32.xlu1 %v916_v4 }
 0x2b2   : > { %v1079_v10 = vpop.f32.mrb[6].mxu1 }
 0x2b3   : > { %v2695_v11 = vpop.f32.mrb[7].mxu1  ;;  %v1083_v12 = vsel %vm746_vm2, %v1079_v10, -inf }
 0x2b4   : > { %1084 = vmax.xlane.f32.xlu0 %v1083_v12 }
 0x2b6   : > { %v1256_v13 = vpop.f32.mrb[8].mxu1 }
 0x2b7   : > { %v2705_v14 = vpop.f32.mrb[9].mxu1  ;;  %v1260_v15 = vsel %vm746_vm2, %v1256_v13, -inf }
 0x2b8   : > { %1261 = vmax.xlane.f32.xlu0 %v1260_v15 }
 0x2ba   : > { %v1433_v16 = vpop.f32.mrb[10].mxu1 }
 0x2bb   : > { %v2715_v17 = vpop.f32.mrb[11].mxu1  ;;  %v1437_v18 = vsel %vm746_vm2, %v1433_v16, -inf }
 0x2bc   : > { %1438 = vmax.xlane.f32.xlu1 %v1437_v18 }
 0x2be   : > { %v1610_v19 = vpop.f32.mrb[12].mxu1 }
 0x2bf   : > { %v2725_v20 = vpop.f32.mrb[13].mxu1  ;;  %v1614_v21 = vsel %vm746_vm2, %v1610_v19, -inf }
 0x2c0   : > { %1615 = vmax.xlane.f32.xlu0 %v1614_v21 }
 0x2c2   : > { %v1787_v22 = vpop.f32.mrb[14].mxu1 }
 0x2c3   : > { %v2735_v23 = vpop.f32.mrb[15].mxu1  ;;  %v1791_v24 = vsel %vm746_vm2, %v1787_v22, -inf }
 0x2c4   : > { %1792 = vmax.xlane.f32.xlu1 %v1791_v24 }
 0x2c6   : > { %v1964_v25 = vpop.f32.mrb[16].mxu1 }
 0x2c7   : > { %v2745_v26 = vpop.f32.mrb[17].mxu1  ;;  %v1968_v27 = vsel %vm746_vm2, %v1964_v25, -inf }
 0x2c8   : > { %1969 = vmax.xlane.f32.xlu0 %v1968_v27 }
 0x2ca   : > { %v2141_v28 = vpop.f32.mrb[18].mxu1 }
 0x2cb   : > { %v2755_v29 = vpop.f32.mrb[19].mxu1  ;;  %v2145_v33 = vsel %vm746_vm2, %v2141_v28, -inf }
 0x2d4   : > { %v918_v30 = vpop.xlane.xlu1 %917 }
 0x2d5   : > { %1275 = vrot.lane.b32.xlu1 %v3568_v9, %s3156_s23  ;;  %v919_v31 = vsub.f32 %v912_v2, %v918_v30  ;;  %s3837_s23 = sld [smem:[#allocation30_spill]] }
 0x2d7   : > { %v920_v32 = vmul.f32 1.442695, %v919_v31 }
 0x2d9   : > { %2902 = vpow2.f32 %v920_v32 }
 0x2db   : > { %s3838_s16 = smov %s3837_s23 }
 0x2de   : > { %1098 = vrot.lane.b32.xlu0 %v3568_v9, %s3154_s18 }
 0x2e3   : > { %v2903_v34 = vpop.eup %2902 }
 0x2e4   : > { %v922_v35 = vsel %vm746_vm2, %v2903_v34, 0.0 }
 0x2f9   : > { %2146 = vmax.xlane.f32.xlu1 %v2145_v33 }
 0x2fd   : > { %923 = vadd.xlane.f32.xlu0 %v922_v35 }
 0x30a   : > { %1452 = vrot.lane.b32.xlu1 %v3568_v9, %s3153_s13  ;;  %s2537_s13 = sshll.u32 %s3413_s20, 6 }
 0x30b   : > { %s3619_s18 = scalar_lea.vmem [#allocation13], %s2537_s13  ;;  %s3836_s13 = sld [smem:[#allocation25_spill]] }
 0x311   : > { %p3839_p5 = scmp.ne.s32.totalorder %s3836_s13, 0 }
 0x341   : > { %v1085_v36 = vpop.xlane.xlu0 %1084 }
 0x342   : > { %v1086_v37 = vsub.f32 %v1079_v10, %v1085_v36 }
 0x344   : > { %v1087_v38 = vmul.f32 1.442695, %v1086_v37 }
 0x345   : > { %v1262_v39 = vpop.xlane.xlu0 %1261 }
 0x346   : > { %2904 = vpow2.f32 %v1087_v38  ;;  %v1263_v40 = vsub.f32 %v1256_v13, %v1262_v39 }
 0x348   : > { %v1264_v41 = vmul.f32 1.442695, %v1263_v40 }
 0x349   : > { %v1439_v46 = vpop.xlane.xlu1 %1438 }
 0x34a   : > { %2906 = vpow2.f32 %v1264_v41  ;;  %v1440_v47 = vsub.f32 %v1433_v16, %v1439_v46 }
 0x34c   : > { %v1441_v51 = vmul.f32 1.442695, %v1440_v47  ;;  %v2243_v47 = vld [vmem:[%s3793_s9] sm:$0xff] }
 0x34d   : > { %v1616_v48 = vpop.xlane.xlu0 %1615 }
 0x34e   : > { %v1617_v50 = vsub.f32 %v1610_v19, %v1616_v48  ;;  %2908 = vpow2.f32 %v1441_v51  ;;  %v2244_v48 = vld [vmem:[%s3793_s9 + $0x8] sm:$0xff]  ;;  %v2245_v51 = vld [vmem:[%s3793_s9 + $0x10] sm:$0xff] }
 0x350   : > { %v3586_v42 = vpop.eup %2904  ;;  %v1618_v54 = vmul.f32 1.442695, %v1617_v50  ;;  %v2793_v50 = vpack.c.bf16 %v2244_v48, %v2243_v47 }
 0x351   : > { %v1089_v43 = vsel %vm746_vm2, %v3586_v42, 0.0  ;;  %v1793_v49 = vpop.xlane.xlu1 %1792 }
 0x352   : > { %1090 = vadd.xlane.f32.xlu1 %v1089_v43  ;;  %v1794_v52 = vsub.f32 %v1787_v22, %v1793_v49  ;;  %2910 = vpow2.f32 %v1618_v54  ;;  %2794 = vmatpush3.bf16.msra.mxu1 %v2793_v50 }
 0x353   : > { %2795 = vmatprep.subr.bf16.mxu1 %v3149_v0 }
 0x354   : > { %v3590_v44 = vpop.eup %2906  ;;  %v1795_v55 = vmul.f32 1.442695, %v1794_v52  ;;  %v2246_v52 = vld [vmem:[%s3793_s9 + $0x18] sm:$0xff] }
 0x355   : > { %v1266_v45 = vsel %vm746_vm2, %v3590_v44, 0.0  ;;  %v1970_v53 = vpop.xlane.xlu0 %1969  ;;  %v1276_v58 = vpop.permute.xlu1 %1275  ;;  %v2796_v54 = vpack.c.bf16 %v2246_v52, %v2245_v51 }
 0x356   : > { %1267 = vadd.xlane.f32.xlu0 %v1266_v45  ;;  %v1971_v56 = vsub.f32 %v1964_v25, %v1970_v53  ;;  %2912 = vpow2.f32 %v1795_v55 }
 0x357   : > { %2797 = vmatpush3.bf16.msra.mxu1 %v2796_v54 }
 0x358   : > { %v1972_v57 = vmul.f32 1.442695, %v1971_v56  ;;  %v3598_v59 = vpop.eup %2908 }
 0x359   : > { %v1099_v61 = vpop.permute.xlu0 %1098  ;;  %v1443_v63 = vsel %vm746_vm2, %v3598_v59, 0.0 }
 0x35a   : > { %2914 = vpow2.f32 %v1972_v57 }
 0x35c   : > { %v3600_v60 = vpop.eup %2910 }
 0x35d   : > { %v1620_v7 = vsel %vm746_vm2, %v3600_v60, 0.0 }
 0x360   : > { %v3604_v2 = vpop.eup %2912 }
 0x361   : > { %v1797_v6 = vsel %vm746_vm2, %v3604_v2, 0.0 }
 0x363   : > { %1806 = vrot.lane.b32.xlu1 %v3568_v9, %s3155_s27 }
 0x364   : > { %v3610_v8 = vpop.eup %2914 }
 0x365   : > { %v1974_v10 = vsel %vm746_vm2, %v3610_v8, 0.0 }
 0x36c   : > { %1629 = vrot.lane.b32.xlu0 %v3568_v9, %s3158_s21  ;;  %s3163_s21 = smov 16  }
 0x386   : > { %v2147_v62 = vpop.xlane.xlu1 %2146 }
 0x387   : > { %v2148_v3 = vsub.f32 %v2141_v28, %v2147_v62  ;;  %1444 = vadd.xlane.f32.xlu1 %v1443_v63 }
 0x389   : > { %v2149_v4 = vmul.f32 1.442695, %v2148_v3 }
 0x38a   : > { %v924_v5 = vpop.xlane.xlu0 %923  ;;  %v1453_v15 = vpop.permute.xlu1 %1452 }
 0x38b   : > { %2916 = vpow2.f32 %v2149_v4  ;;  %1798 = vadd.xlane.f32.xlu1 %v1797_v6  ;;  %1621 = vadd.xlane.f32.xlu0 %v1620_v7 }
 0x38c   : > { %2918 = vrcp.f32 %v924_v5 }
 0x38f   : > { %1975 = vadd.xlane.f32.xlu0 %v1974_v10 }
 0x395   : > { %v3615_v11 = vpop.eup %2916 }
 0x396   : > { %v2919_v12 = vpop.eup %2918  ;;  %v2151_v13 = vsel %vm746_vm2, %v3615_v11, 0.0 }
 0x397   : > { %v926_v14 = vmul.f32 %v2919_v12, %v2903_v34  ;;  %2152 = vadd.xlane.f32.xlu1 %v2151_v13 }
 0x399   : > { %927 = vst.msk [vmem:[%s3619_s18] sm:$0xff] %vm746_vm2, %v926_v14  ;;  %2689 = vmatmul.mubr.msk.f32.vlgmr.msra.gmra.mrb[4].mxu0 %vm746_vm2, %v926_v14 }
 0x39a   : > { %2697 = vmatpush3.msra.mxu0 %v1099_v61  ;;  %2698 = vmatprep.mubr.msk.f32.mxu0 %vm3150_vm0, %v3151_v1 }
 0x39b   : > { %2706 = vmatprep.subr.mxu0 %v3151_v1 }
 0x3a5   : > { %1983 = vrot.lane.b32.xlu0 %v3568_v9, %s3159_s10  ;;  %s3164_s10 = smov 20  }
 0x3a8   : > { %2160 = vrot.lane.b32.xlu1 %v3568_v9, %s3157_s4  ;;  %s3167_s4 = smov [#allocation13]  }
 0x3df   : > { %v1091_v16 = vpop.xlane.xlu1 %1090 }
 0x3e0   : > { %2920 = vrcp.f32 %v1091_v16 }
 0x3e3   : > { %v1268_v17 = vpop.xlane.xlu0 %1267  ;;  %v1807_v9 = vpop.permute.xlu1 %1806 }
 0x3e4   : > { %2922 = vrcp.f32 %v1268_v17 }
 0x3e7   : > { %v1630_v22 = vpop.permute.xlu0 %1629 }
 0x3ea   : > { %v2921_v18 = vpop.eup %2920 }
 0x3eb   : > { %v1093_v19 = vmul.f32 %v2921_v18, %v3586_v42 }
 0x3ed   : > { %2553 = vst.msk [vmem:[%s3619_s18 + $0x8] sm:$0xff] %vm746_vm2, %v1093_v19  ;;  %2699 = vmatmul.mubr.msk.f32.vlgmr.msra.gmra.mrb[6].mxu0 %vm746_vm2, %v1093_v19 }
 0x3ee   : > { %v2923_v20 = vpop.eup %2922  ;;  %2707 = vmatpush3.msra.mxu0 %v1276_v58  ;;  %2708 = vmatprep.mubr.msk.f32.mxu0 %vm3150_vm0, %v3151_v1 }
 0x3ef   : > { %v1270_v21 = vmul.f32 %v2923_v20, %v3590_v44  ;;  %2716 = vmatprep.subr.mxu0 %v3151_v1 }
 0x3f1   : > { %2557 = vst.msk [vmem:[%s3619_s18 + $0x10] sm:$0xff] %vm746_vm2, %v1270_v21  ;;  %2709 = vmatmul.mubr.msk.f32.vlgmr.msra.gmra.mrb[8].mxu0 %vm746_vm2, %v1270_v21 }
 0x3f2   : > { %2717 = vmatpush3.msra.mxu0 %v1453_v15  ;;  %2718 = vmatprep.mubr.msk.f32.mxu0 %vm3150_vm0, %v3151_v1 }
 0x3f3   : > { %2726 = vmatprep.subr.mxu0 %v3151_v1 }
 0x414   : > { %v1445_v23 = vpop.xlane.xlu1 %1444 }
 0x415   : > { %2924 = vrcp.f32 %v1445_v23 }
 0x418   : > { %v1799_v24 = vpop.xlane.xlu1 %1798  ;;  %v1622_v25 = vpop.xlane.xlu0 %1621 }
 0x419   : > { %2926 = vrcp.f32 %v1799_v24 }
 0x41a   : > { %2928 = vrcp.f32 %v1622_v25 }
 0x41c   : > { %v1976_v26 = vpop.xlane.xlu0 %1975 }
 0x41d   : > { %2930 = vrcp.f32 %v1976_v26 }
 0x41f   : > { %v2925_v27 = vpop.eup %2924 }
 0x420   : > { %v1447_v28 = vmul.f32 %v2925_v27, %v3598_v59  ;;  %v1984_v36 = vpop.permute.xlu0 %1983 }
 0x422   : > { %2561 = vst.msk [vmem:[%s3619_s18 + $0x18] sm:$0xff] %vm746_vm2, %v1447_v28  ;;  %2719 = vmatmul.mubr.msk.f32.vlgmr.msra.gmra.mrb[10].mxu0 %vm746_vm2, %v1447_v28 }
 0x423   : > { %v2927_v29 = vpop.eup %2926  ;;  %2727 = vmatpush3.msra.mxu0 %v1630_v22  ;;  %2728 = vmatprep.mubr.msk.f32.mxu0 %vm3150_vm0, %v3151_v1 }
 0x424   : > { %v2929_v30 = vpop.eup %2928  ;;  %v1801_v31 = vmul.f32 %v2927_v29, %v3604_v2  ;;  %v2153_v32 = vpop.xlane.xlu1 %2152  ;;  %2736 = vmatprep.subr.mxu0 %v3151_v1 }
 0x425   : > { %v1624_v33 = vmul.f32 %v2929_v30, %v3600_v60  ;;  %2932 = vrcp.f32 %v2153_v32 }
 0x426   : > { %2569 = vst.msk [vmem:[%s3619_s18 + $0x28] sm:$0xff] %vm746_vm2, %v1801_v31 }
 0x427   : > { %v2931_v34 = vpop.eup %2930  ;;  %2565 = vst.msk [vmem:[%s3619_s18 + $0x20] sm:$0xff] %vm746_vm2, %v1624_v33  ;;  %2729 = vmatmul.mubr.msk.f32.vlgmr.msra.gmra.mrb[12].mxu0 %vm746_vm2, %v1624_v33 }
 0x428   : > { %v1978_v35 = vmul.f32 %v2931_v34, %v3610_v8  ;;  %2737 = vmatpush3.msra.mxu0 %v1807_v9  ;;  %2738 = vmatprep.mubr.msk.f32.mxu0 %vm3150_vm0, %v3151_v1  ;;  %v2161_v38 = vpop.permute.xlu1 %2160 }
 0x429   : > { %2746 = vmatprep.subr.mxu0 %v3151_v1 }
 0x42a   : > { %2573 = vst.msk [vmem:[%s3619_s18 + $0x30] sm:$0xff] %vm746_vm2, %v1978_v35 }
 0x42b   : > { %2739 = vmatmul.mubr.msk.f32.vlgmr.msra.gmra.mrb[14].mxu0 %vm746_vm2, %v1801_v31 }
 0x42c   : > { %2747 = vmatpush3.msra.mxu0 %v1984_v36  ;;  %2748 = vmatprep.mubr.msk.f32.mxu0 %vm3150_vm0, %v3151_v1 }
 0x42d   : > { %2756 = vmatprep.subr.mxu0 %v3151_v1 }
 0x42f   : > { %v2933_v37 = vpop.eup %2932  ;;  %2749 = vmatmul.mubr.msk.f32.vlgmr.msra.gmra.mrb[16].mxu0 %vm746_vm2, %v1978_v35 }
 0x430   : > { %v2155_v39 = vmul.f32 %v2933_v37, %v3615_v11  ;;  %2757 = vmatpush3.msra.mxu0 %v2161_v38  ;;  %2758 = vmatprep.mubr.msk.f32.mxu0 %vm3150_vm0, %v3151_v1 }
 0x432   : > { %2577 = vst.msk [vmem:[%s3619_s18 + $0x38] sm:$0xff] %vm746_vm2, %v2155_v39 }
 0x433   : > { %2759 = vmatmul.mubr.msk.f32.vlgmr.msra.gmra.mrb[18].mxu0 %vm746_vm2, %v2155_v39 }
 0x46c   : > { %v998_v40 = vpop.f32.mrb[4].mxu0 }
 0x46d   : > { %1002 = vst.msk [vmem:[#allocation5] sm:$0xff] %vm838_vm4, %v998_v40  ;;  %v2690_v41 = vpop.f32.mrb[5].mxu0 }
 0x4c0   : > { %v1170_v42 = vpop.f32.mrb[6].mxu0 }
 0x4c1   : > { %1175 = vrot.lane.b32.xlu0 %v1170_v42, %s3160_s28  ;;  %v2700_v43 = vpop.f32.mrb[7].mxu0  ;;  %s2589_s28 = sshll.u32 %s3136_s24, 10 }
 0x4c2   : > { %s3697_s11 = scalar_lea.hbm %s3837_s23, %s2589_s28 }
 0x4c4   : > { %v1347_v44 = vpop.f32.mrb[8].mxu0 }
 0x4c5   : > { %1352 = vrot.lane.b32.xlu1 %v1347_v44, %s3161_s29  ;;  %v2710_v45 = vpop.f32.mrb[9].mxu0 }
 0x4f5   : > { %v1524_v46 = vpop.f32.mrb[10].mxu0 }
 0x4f6   : > { %1529 = vrot.lane.b32.xlu0 %v1524_v46, %s3162_s19  ;;  %v2720_v1 = vpop.f32.mrb[11].mxu0  ;;  %s2362_s19 = sshll.u32 %s3619_s18, 4  ;;  %s3699_s19 = int_to_ptr.vmem [resolvable:$true] %s2362_s19 }
 0x4f7   : > { %s3022_s15 = scalar_lea.vmem %s3699_s19, 1024 }
 0x4f8   : > { %p3023_p0 = scmp.ne.s32.totalorder %s3699_s19, %s3022_s15 }
 0x4fa   : > { %v1701_v49 = vpop.f32.mrb[12].mxu0  ;;  %p3024_p10 = pnand %p3023_p0, %p3839_p5 }
 0x4fb   : > { %1706 = vrot.lane.b32.xlu1 %v1701_v49, %s3163_s21  ;;  %v2730_v53 = vpop.f32.mrb[13].mxu0  ;;  %s3026_s21 = sshll.u32 %s3167_s4, 4  ;;  %s3027_s21 = int_to_ptr.vmem [resolvable:$false] %s3026_s21 }
 0x4fc   : > { %p3025_p1 = pneg %p3024_p10  ;;  %s3028_s18 = scalar_lea.vmem %s3027_s21, 2048 }
 0x4fd   : > { %p3029_p2 = scmp.lt.s32.totalorder %s3699_s19, %s3027_s21  ;;  %p3030_p7 = scmp.lt.s32.totalorder %s3028_s18, %s3022_s15 }
 0x4fe   : > { %v1878_v55 = vpop.f32.mrb[14].mxu0 }
 0x4ff   : > { %1883 = vrot.lane.b32.xlu0 %v1878_v55, %s3164_s10  ;;  %v2740_v56 = vpop.f32.mrb[15].mxu0  ;;  %p3031_p4 = por %p3030_p7, %p3029_p2 }
 0x501   : > { %p3032_p8 = pnand %p3031_p4, %p3025_p1 }
 0x502   : > { %v2055_v57 = vpop.f32.mrb[16].mxu0 }
 0x503   : > { %2060 = vrot.lane.b32.xlu1 %v2055_v57, %s3165_s14  ;;  %v2750_v58 = vpop.f32.mrb[17].mxu0 }
 0x506   : > { %v2232_v59 = vpop.f32.mrb[18].mxu0 }
 0x507   : > { %2237 = vrot.lane.b32.xlu0 %v2232_v59, %s3166_s30  ;;  %v2760_v60 = vpop.f32.mrb[19].mxu0 }
 0x533   : > { %v1176_v61 = vpop.permute.xlu0 %1175 }
 0x534   : > { %1179 = vst.msk [vmem:[#allocation5] sm:$0xff] %vm1178_vm5, %v1176_v61 }
 0x537   : > { %v1353_v62 = vpop.permute.xlu1 %1352 }
 0x538   : > { %1356 = vst.msk [vmem:[#allocation5] sm:$0xff] %vm1355_vm6, %v1353_v62 }
 0x568   : > { %v1530_v0 = vpop.permute.xlu0 %1529 }
 0x569   : > { %1533 = vst.msk [vmem:[#allocation5] sm:$0xff] %vm1532_vm7, %v1530_v0 }
 0x56d   : > { %v1707_v63 = vpop.permute.xlu1 %1706 }
 0x56e   : > { %1710 = vst.msk [vmem:[#allocation5] sm:$0xff] %vm1709_vm8, %v1707_v63 }
 0x571   : > { %v1884_v2 = vpop.permute.xlu0 %1883 }
 0x572   : > { %1887 = vst.msk [vmem:[#allocation5] sm:$0xff] %vm1886_vm9, %v1884_v2 }
 0x575   : > { %v2061_v3 = vpop.permute.xlu1 %2060 }
 0x576   : > { %2064 = vst.msk [vmem:[#allocation5] sm:$0xff] %vm2063_vm10, %v2061_v3 }
 0x579   : > { %v2238_v4 = vpop.permute.xlu0 %2237 }
 0x57a   : > { %2241 = vst.msk [vmem:[#allocation5] sm:$0xff] %vm2240_vm11, %v2238_v4 }
 0x581   : > { %v2242_v5 = vld [vmem:[#allocation5] sm:$0xff] }
 0x582   : > { %2770 = vmatmul.mubr.msk.f32.vlgmr.msra.gmra.mrb[20].mxu1 %vm545_vm1, %v2242_v5 }
 0x583   : > { %3035 = shalt.err (!%p3032_p8)
}
 0x584   : > { %s3036_s10 = scalar_lea.hbm %s3697_s11, 1024  ;;  %s3040_s28 = scalar_lea.hbm %s3838_s16, 2048 }
 0x585   : > { %p3037_p9 = scmp.ne.s32.totalorder %s3697_s11, %s3036_s10  ;;  %p3041_p11 = scmp.lt.u32.totalorder %s3697_s11, %s3838_s16 }
 0x586   : > { %p3042_p3 = scmp.lt.u32.totalorder %s3040_s28, %s3036_s10  ;;  %p3044_p0 = scmp.lt.u32.totalorder %s3036_s10, %s3697_s11 }
 0x587   : > { %p3038_p6 = pnand %p3037_p9, %p3839_p5 }
 0x588   : > { %p3043_p12 = por %p3042_p3, %p3041_p11 }
 0x589   : > { %p3039_p13 = pneg %p3038_p6 }
 0x58a   : > { %p3045_p10 = por %p3044_p0, %p3043_p12 }
 0x58c   : > { %p3046_p1 = pnand %p3045_p10, %p3039_p13 }
 0x58e   : > { %3049 = shalt.err (!%p3046_p1)
}
 0x58f   : > { %s3168_s23 = smov 128   ;;  %s3840_s21 = sld [smem:[#allocation28_spill]] }
 0x590   : > { %2807 = dma.vmem_to_hbm [thread:$0]  (%p3839_p5), %s3699_s19, 1024, %s3697_s11, %s2334_s25, %s3168_s23, %s3168_s23, %s3161_s29  }
 0x591   : > { %s2583_s18 = sshll.u32 %s3136_s24, 7  ;;  %s515_s10 = scalar_lea.vmem [#allocation12], %s3416_s12 }
 0x592   : > { %s2348_s14 = sshll.u32 %s515_s10, 4  ;;  %s3841_s17 = sld [smem:[#allocation29_spill]]  ;;  %s3736_s14 = int_to_ptr.vmem [resolvable:$true] %s2348_s14 }
 0x593   : > { %s2329_s29 = scalar_lea.sflag [#allocation8], %s3413_s20  ;;  %s3050_s19 = scalar_lea.vmem %s3736_s14, 128 }
 0x594   : > { %p3051_p2 = scmp.ne.s32.totalorder %s3736_s14, %s3050_s19  ;;  %s3169_s24 = smov [#allocation12]  }
 0x595   : > { %v2579_v6 = vld [vmem:[%s3840_s21] ss:$0 sm:$0xff]  ;;  %s3054_s12 = sshll.u32 %s3169_s24, 4  ;;  %s3055_s12 = int_to_ptr.vmem [resolvable:$false] %s3054_s12 }
 0x596   : > { %p3052_p7 = pnand %p3051_p2, %p3839_p5  ;;  %s3056_s11 = scalar_lea.vmem %s3055_s12, 256 }
 0x597   : > { %p3057_p8 = scmp.lt.s32.totalorder %s3736_s14, %s3055_s12  ;;  %p3058_p9 = scmp.lt.s32.totalorder %s3056_s11, %s3050_s19 }
 0x598   : > { %s3734_s27 = scalar_lea.hbm %s3841_s17, %s2583_s18  ;;  %p3053_p4 = pneg %p3052_p7 }
 0x599   : > { %p3059_p6 = por %p3058_p9, %p3057_p8 }
 0x59b   : > { %p3060_p13 = pnand %p3059_p6, %p3053_p4 }
 0x655   : > { %v2323_v7 = vpop.f32.mrb[20].mxu1 }
 0x656   : > { %v2324_v8 = vadd.f32 %v2579_v6, %v2323_v7  ;;  %v2771_v10 = vpop.f32.mrb[21].mxu1 }
 0x658   : > { %2327 = vst.msk [vmem:[%s515_s10] sm:$0xff] %vm545_vm1, %v2324_v8 }
 0x659   : > { %3063 = shalt.err (!%p3060_p13)
}
 0x65a   : > { %s3064_s20 = scalar_lea.hbm %s3734_s27, 128  ;;  %s3068_s15 = scalar_lea.hbm %s3841_s17, 256 }
 0x65b   : > { %p3065_p11 = scmp.ne.s32.totalorder %s3734_s27, %s3064_s20  ;;  %p3069_p0 = scmp.lt.u32.totalorder %s3734_s27, %s3841_s17 }
 0x65c   : > { %p3070_p10 = scmp.lt.u32.totalorder %s3068_s15, %s3064_s20  ;;  %p3072_p2 = scmp.lt.u32.totalorder %s3064_s20, %s3734_s27 }
 0x65d   : > { %p3066_p3 = pnand %p3065_p11, %p3839_p5 }
 0x65e   : > { %p3071_p1 = por %p3070_p10, %p3069_p0 }
 0x65f   : > { %p3067_p12 = pneg %p3066_p3 }
 0x660   : > { %p3073_p7 = por %p3072_p2, %p3071_p1 }
 0x662   : > { %p3074_p4 = pnand %p3073_p7, %p3067_p12 }
 0x664   : > { %3077 = shalt.err (!%p3074_p4)
}
 0x665   : > { %2806 = dma.vmem_to_hbm [thread:$0]  (%p3839_p5), %s3736_s14, 128, %s3734_s27, %s2329_s29  }
 0x666 PF: > { %s3842_s18 = sld [smem:[#allocation20_spill]]  ;;  %s3843_s10 = sld [smem:[#allocation23_spill]] }
 0x667   : > { %p3845_p9 = scmp.ge.s32.totalorder %s3144_s26, 2 }
 0x66c   : > { %s2377_s30 = sand.u32 1, %s3842_s18   ;;  %p3844_p8 = scmp.ne.s32.totalorder %s3843_s10, 0 }
 0x66d   : > { %s2378_s28 = scalar_lea.sflag [#allocation8], %s2377_s30 }
 0x66e   : > { %p2822_p6 = pnand %p3845_p9, %p3844_p8 }
 0x670   : > { %3115 = dma.done.wait (!%p2822_p6), %s2378_s28, 128  }
 0x671   : > { %3117 = vsyncadd (!%p2822_p6), %s2378_s28, 4294967168  ;;  %s2387_s19 = scalar_lea.sflag [#allocation14], %s2377_s30 }
 0x672   : > { %3119 = dma.done.wait (!%p2822_p6), %s2387_s19, 1024  }
 0x673   : > { %3121 = vsyncadd (!%p2822_p6), %s2387_s19, 4294966272  ;;  %s35_s26 = sadd.s32 1, %s3144_s26   ;;  %s3846_s13 = sld [smem:[#allocation21_spill]] }
 0x674   : > { %p32_p13 = scmp.ge.s32.totalorder %s35_s26, 4   ;;  %s3847_s23 = sld [smem:[#allocation26_spill]] }
 0x675   : > { %s3848_s24 = sld [smem:[#allocation22_spill]]  ;;  %s3849_s25 = sld [smem:[#allocation24_spill]] }
 0x676   : > { %s3850_s21 = smov %s3128_s22  ;;  %34 = sbr.rel (!%p32_p13) target bundleno = 15 (0xf), region = 153 }
 0x679   : > { %s3851_s22 = smov %s3846_s13 }
 0x67d   :  { %2392 = vsyncpa [#allocation7], 1 }
 0x67e   :  { %2394 = vsyncpa [#allocation7 + $0x1], 1 }
 0x67f   :  { %2395 = vsyncpa [#allocation10], 1 }
 0x680   :  { %2397 = vsyncpa [#allocation10 + $0x1], 1 }
 0x681   :  { %2398 = vsyncpa [#allocation8], 1 }
 0x682   :  { %2400 = vsyncpa [#allocation8 + $0x1], 1 }
 0x683   :  { %2401 = vsyncpa [#allocation14], 1 }
 0x684   :  { %2403 = vsyncpa [#allocation14 + $0x1], 1 }

</bundles_post_ra>
